<compile_context>
chip_gen: v7x
topology: tpu7x:2x2x1
jax: 0.10.0
libtpu: 0.0.40
codegen_flags: <defaults>
</compile_context>

<pallas_src>
import functools

import jax
import jax.numpy as jnp
from jax.experimental import pallas as pl
from jax.experimental.pallas import tpu as pltpu

GAMMA = 0.0016567
L_FIBER = 2000000.0
_HALO = 128           # lane-aligned halo width (supports ntaps - 1 <= 128)
_T_DEFAULT = 4096     # time tile (lanes); multiple of 128

# ---- shared-range-reduction sincos ------------------------------------------------
_TWO_OVER_PI = 0.6366197723675814
_PIO2_HI = 1.5707963705062866       # float32(pi/2)
_PIO2_LO = -4.371139000186243e-08   # pi/2 - float32(pi/2)


def _sincos(phi):
    """(sin(phi), cos(phi)) with ONE shared Cody-Waite range reduction.

    Quadrant reduction to [-pi/4, pi/4] plus cephes sinf/cosf minimax polynomials;
    ~1e-6 absolute error for |phi| << 2**22 (ample for a nonlinear phase rotation).
    Avoids two independent range-reduction expansions on the VPU.
    """
    k = jnp.floor(phi * _TWO_OVER_PI + 0.5)          # nearest quadrant index (float)
    q = k.astype(jnp.int32)
    r = phi - k * _PIO2_HI
    r = r - k * _PIO2_LO
    z = r * r
    s_r = r + r * z * (-1.6666654611e-1
                       + z * (8.3321608736e-3 + z * (-1.9515295891e-4)))
    c_r = 1.0 - 0.5 * z + z * z * (4.166664568298827e-2
                                   + z * (-1.388731625493765e-3
                                          + z * 2.443315711809948e-5))
    odd = (q & 1) == 1
    sin_base = jnp.where(odd, c_r, s_r)
    cos_base = jnp.where(odd, s_r, c_r)
    s = jnp.where((q & 2) == 0, sin_base, -sin_base)
    c = jnp.where(((q + 1) & 2) == 0, cos_base, -cos_base)
    return s, c


def _nlf_kernel(nmodes, ntaps, t_tile, kcoef_ref, xmain_ref, xhalo_ref, out_ref):
    """One grid step = one (batch-block, time-tile).

    kcoef_ref : VMEM [Nmodes, 8, ntaps]  taps per sublane row, pre-scaled by
                                         gamma*P[b]*L/step (row = mode*G + local_batch)
    xmain_ref : VMEM [16, T]             rows 0-7 Re, 8-15 Im (time on lanes)
    xhalo_ref : VMEM [16, 128]           next 128 time samples (halo)
    out_ref   : VMEM [16, T]             rows 0-7 Re(out), 8-15 Im(out)
    """
    g = 8 // nmodes
    half = ntaps // 2
    ext = t_tile + _HALO

    # ONE 16-row concat (main + lane-aligned halo); Re/Im are aligned sublane slices.
    xall = jnp.concatenate([xmain_ref[...], xhalo_ref[...]], axis=1)   # [16, ext]
    xr = xall[0:8, :]
    xi = xall[8:16, :]
    power = xr * xr + xi * xi                                          # |x|^2, [8, ext]

    k_same = kcoef_ref[0]                                              # [8, ntaps]
    acc_same = k_same[:, 0:1] * power[:, :t_tile]                      # t = 0 (aligned)
    if nmodes == 2:
        k_cross = kcoef_ref[1]                                         # [8, ntaps]
        acc_cross = k_cross[:, 0:1] * power[:, :t_tile]

    # Each shifted window power[:, t:t+T] is delivered by an XLU lane rotation plus
    # an aligned slice (wrapped lanes land at indices >= T and are discarded since
    # ntaps - 1 <= 128).  The same window feeds both same-mode and cross-mode sums.
    for t in range(1, ntaps):
        win = pltpu.roll(power, shift=ext - t, axis=1)[:, :t_tile]     # == power[:, t:t+T]
        acc_same = acc_same + k_same[:, t:t + 1] * win
        if nmodes == 2:
            acc_cross = acc_cross + k_cross[:, t:t + 1] * win

    phi = acc_same
    if nmodes == 2:
        # Swap the two mode groups (rows 0..g-1 <-> rows g..2g-1).
        phi = phi + pltpu.roll(acc_cross, shift=g, axis=0)

    s, c = _sincos(phi)

    # Center-tap window x[:, half : half+T] via one lane rotation of the 16-row slab.
    if half == 0:
        xc = xall[:, :t_tile]
    else:
        xc = pltpu.roll(xall, shift=ext - half, axis=1)[:, :t_tile]
    xr_c = xc[0:8, :]
    xi_c = xc[8:16, :]
    # (xr_c + i*xi_c) * (cos + i*sin)
    out_ref[0:8, :] = xr_c * c - xi_c * s
    out_ref[8:16, :] = xr_c * s + xi_c * c


def nonlinear_filter_forward(x, task_info, i, nkernels, *, step, ntaps,
                             gamma=GAMMA, L=L_FIBER, t_tile=_T_DEFAULT):
    """x: [B, M, Nmodes] complex64 -> [B, M - ntaps + 1, Nmodes] complex64."""
    B, M, Nmodes = x.shape
    assert Nmodes in (1, 2), "sublane packing implemented for Nmodes in {1, 2}"
    assert ntaps % 2 == 1, "odd ntaps (module's center-tap slicing assumes odd)"
    assert ntaps - 1 <= _HALO, "ntaps - 1 must fit the 128-lane halo"
    assert t_tile % 128 == 0
    Mout = M - ntaps + 1
    assert Mout > 0

    G = 8 // Nmodes                       # batch elements packed per sublane block
    Bblocks = -(-B // G)
    Bp = Bblocks * G

    # ---- time tiling: as large as possible; keep >= 2 grid blocks for v7x ---------
    lane_blocks = -(-Mout // 128)                     # output length in 128-lane blocks
    T = min(t_tile, lane_blocks * 128)
    if Bblocks == 1 and lane_blocks > 1:
        # v7x shards the 'parallel' grid axes across its 2 TensorCores; avoid a 1x1 grid.
        T = min(T, (-(-lane_blocks // 2)) * 128)
    Mtiles = -(-Mout // T)
    Mout_pad = Mtiles * T
    Mext = Mout_pad + _HALO               # main tiles + one halo block of padding

    # ---- taps, pre-scaled per batch, laid out per sublane row ---------------------
    # NOTE: `i` must be a static Python int (same constraint as the PyTorch module).
    K = nkernels[min(i, len(nkernels) - 1)].astype(jnp.float32)     # [Nmodes,Nmodes,ntaps]
    P = 0.001 * 10.0 ** (task_info[:, 0].astype(jnp.float32) / 10.0) / Nmodes
    scale = (gamma * P * L / step).astype(jnp.float32)              # [B]
    scale = jnp.pad(scale, (0, Bp - B)).reshape(Bblocks, G)         # [Bblocks, G]
    scale_rows = jnp.tile(scale, (1, Nmodes))                       # [Bblocks, 8], row = m*G+g

    m_idx = jnp.arange(8) // G                                      # mode of each sublane row
    d_idx = jnp.arange(Nmodes)[:, None]
    # kcoef[d, r, t] = K[(m(r)+d) % Nmodes, m(r), t]  (cross term indexed so that a
    # roll of the accumulator by G sublanes delivers it to the right output row).
    kgrid = K[(m_idx[None, :] + d_idx) % Nmodes, m_idx[None, :], :]   # [Nmodes, 8, ntaps]
    kcoef = kgrid[None, :, :, :] * scale_rows[:, None, :, None]       # [Bblocks,Nmodes,8,ntaps]

    # ---- pack input into planar [Bblocks, 16, Mext] float32 -----------------------
    # rows 0-7 = Re, rows 8-15 = Im; within each half: mode-major, batch-minor.
    xf = jnp.stack([jnp.real(x), jnp.imag(x)], axis=-1).astype(jnp.float32)  # [B,M,Nmodes,2]
    xf = jnp.pad(xf, ((0, Bp - B), (0, Mext - M), (0, 0), (0, 0)))
    xf = xf.reshape(Bblocks, G, Mext, Nmodes, 2)
    xf = jnp.transpose(xf, (0, 4, 3, 1, 2)).reshape(Bblocks, 16, Mext)

    kern = functools.partial(_nlf_kernel, Nmodes, ntaps, T)
    out = pl.pallas_call(
        kern,
        grid=(Bblocks, Mtiles),
        in_specs=[
            pl.BlockSpec((None, Nmodes, 8, ntaps), lambda bb, mt: (bb, 0, 0, 0)),
            pl.BlockSpec((None, 16, T), lambda bb, mt: (bb, 0, mt)),
            # Halo: the same array, read as the 128-lane block right after this tile.
            pl.BlockSpec((None, 16, _HALO),
                         lambda bb, mt: (bb, 0, (mt + 1) * (T // _HALO))),
        ],
        out_specs=pl.BlockSpec((None, 16, T), lambda bb, mt: (bb, 0, mt)),
        out_shape=jax.ShapeDtypeStruct((Bblocks, 16, Mout_pad), jnp.float32),
        compiler_params=pltpu.CompilerParams(
            dimension_semantics=("parallel", "parallel"),
            vmem_limit_bytes=32 * 1024 * 1024,
        ),
    )(kcoef, xf, xf)

    # ---- unpack back to [B, Mout, Nmodes] complex64 --------------------------------
    out = out.reshape(Bblocks, 2, Nmodes, G, Mout_pad)
    out = jnp.transpose(out, (0, 3, 4, 2, 1)).reshape(Bp, Mout_pad, Nmodes, 2)
    out = out[:B, :Mout]
    return jax.lax.complex(out[..., 0], out[..., 1])


def _reference(x, task_info, K, *, step, ntaps, gamma=GAMMA, L=L_FIBER):
    """Pure-JAX reference implementing the PyTorch forward semantics."""
    B, M, Nmodes = x.shape
    Mout = M - ntaps + 1
    P = 0.001 * 10.0 ** (task_info[:, 0] / 10.0) / Nmodes
    power = jnp.abs(x) ** 2                                        # [B, M, Nmodes]
    idx = jnp.arange(Mout)[:, None] + jnp.arange(ntaps)[None, :]   # [Mout, ntaps]
    win = power[:, idx, :]                                         # [B, Mout, ntaps, Nmodes]
    phi = jnp.einsum('bitq,pqt->bip', win, K)                      # [B, Mout, Nmodes]
    xc = x[:, ntaps // 2: M - ntaps // 2, :]
    return xc * jnp.exp(1j * phi * gamma * P[:, None, None] * L / step)


if __name__ == "__main__":
    # Small shapes consistent with the module: Nmodes=2, odd ntaps, step=5.
    # B=5 exercises batch padding + two batch blocks; M=640 exercises the T cap.
    B, M, Nmodes, ntaps, step = 5, 640, 2, 9, 5
    share = True

    key = jax.random.PRNGKey(0)
    k1, k2, k3, k4 = jax.random.split(key, 4)

    xr_ = jax.random.normal(k1, (B, M, Nmodes), jnp.float32)
    xi_ = jax.random.normal(k2, (B, M, Nmodes), jnp.float32)
    x = (xr_ + 1j * xi_).astype(jnp.complex64)

    # task_info[:, 0] is launch power in dBm; other columns unused by this forward.
    task_info = jnp.concatenate(
        [jax.random.uniform(k3, (B, 1), jnp.float32, -2.0, 2.0),
         jnp.zeros((B, 3), jnp.float32)], axis=1)

    # Module init is zeros; small random taps so the nonlinear phase path is exercised.
    n_num = 1 if share else step
    nkernels = [0.01 * jax.random.normal(jax.random.fold_in(k4, n),
                                         (Nmodes, Nmodes, ntaps), jnp.float32)
                for n in range(n_num)]

    out = nonlinear_filter_forward(x, task_info, 0, nkernels, step=step, ntaps=ntaps)
    out = jax.block_until_ready(out)

    ref = _reference(x, task_info, nkernels[0], step=step, ntaps=ntaps)
    assert out.shape == (B, M - ntaps + 1, Nmodes), out.shape
    assert jnp.allclose(out, ref, atol=2e-4, rtol=2e-4), "mismatch vs JAX reference"
    print("KERNEL_OK")
</pallas_src>

<mosaic_0001>
module attributes {stable_mosaic.version = 11 : i64} {
  func.func @_nlf_kernel(%arg0: i32, %arg1: i32, %arg2: memref<1x2x8x9xf32, #tpu.memory_space<vmem>>, %arg3: memref<1x16x640xf32, #tpu.memory_space<vmem>>, %arg4: memref<1x16x128xf32, #tpu.memory_space<vmem>>, %arg5: memref<1x16x640xf32, #tpu.memory_space<vmem>>) attributes {dimension_semantics = [#tpu.dimension_semantics<parallel>, #tpu.dimension_semantics<parallel>], iteration_bounds = array<i64: 2, 1>, scalar_prefetch = 0 : i64, scratch_operands = 0 : i64, tpu.core_type = #tpu.core_type<tc>, window_params = [{transform_indices = @transform_0, window_bounds = array<i64: 1, 2, 8, 9>}, {transform_indices = @transform_1, window_bounds = array<i64: 1, 16, 640>}, {transform_indices = @transform_2, window_bounds = array<i64: 1, 16, 128>}, {transform_indices = @transform_3, window_bounds = array<i64: 1, 16, 640>}]} {
    %c0 = arith.constant 0 : index
    %c0_0 = arith.constant 0 : index
    %c0_1 = arith.constant 0 : index
    %0 = vector.load %arg3[%c0, %c0_0, %c0_1] : memref<1x16x640xf32, #tpu.memory_space<vmem>>, vector<1x16x640xf32>
    %1 = vector.shape_cast %0 : vector<1x16x640xf32> to vector<16x640xf32>
    %c0_2 = arith.constant 0 : index
    %c0_3 = arith.constant 0 : index
    %c0_4 = arith.constant 0 : index
    %2 = vector.load %arg4[%c0_2, %c0_3, %c0_4] : memref<1x16x128xf32, #tpu.memory_space<vmem>>, vector<1x16x128xf32>
    %3 = vector.shape_cast %2 : vector<1x16x128xf32> to vector<16x128xf32>
    %4 = tpu.concatenate %1, %3 in 1 : vector<16x640xf32>, vector<16x128xf32> -> vector<16x768xf32>
    %5 = vector.extract_strided_slice %4 {offsets = [0, 0], sizes = [8, 768], strides = [1, 1]} : vector<16x768xf32> to vector<8x768xf32>
    %6 = vector.extract_strided_slice %4 {offsets = [8, 0], sizes = [8, 768], strides = [1, 1]} : vector<16x768xf32> to vector<8x768xf32>
    %7 = arith.mulf %5, %5 : vector<8x768xf32>
    %8 = arith.mulf %6, %6 : vector<8x768xf32>
    %9 = arith.addf %7, %8 : vector<8x768xf32>
    %c0_5 = arith.constant 0 : index
    %c0_6 = arith.constant 0 : index
    %c0_7 = arith.constant 0 : index
    %c0_8 = arith.constant 0 : index
    %10 = vector.load %arg2[%c0_5, %c0_6, %c0_7, %c0_8] : memref<1x2x8x9xf32, #tpu.memory_space<vmem>>, vector<1x1x8x9xf32>
    %11 = vector.shape_cast %10 : vector<1x1x8x9xf32> to vector<8x9xf32>
    %12 = vector.extract_strided_slice %11 {offsets = [0, 0], sizes = [8, 1], strides = [1, 1]} : vector<8x9xf32> to vector<8x1xf32>
    %13 = vector.extract_strided_slice %9 {offsets = [0, 0], sizes = [8, 640], strides = [1, 1]} : vector<8x768xf32> to vector<8x640xf32>
    %14 = vector.broadcast %12 : vector<8x1xf32> to vector<8x640xf32>
    %15 = arith.mulf %14, %13 : vector<8x640xf32>
    %c0_9 = arith.constant 0 : index
    %c1 = arith.constant 1 : index
    %c0_10 = arith.constant 0 : index
    %c0_11 = arith.constant 0 : index
    %16 = vector.load %arg2[%c0_9, %c1, %c0_10, %c0_11] : memref<1x2x8x9xf32, #tpu.memory_space<vmem>>, vector<1x1x8x9xf32>
    %17 = vector.shape_cast %16 : vector<1x1x8x9xf32> to vector<8x9xf32>
    %18 = vector.extract_strided_slice %17 {offsets = [0, 0], sizes = [8, 1], strides = [1, 1]} : vector<8x9xf32> to vector<8x1xf32>
    %19 = vector.extract_strided_slice %9 {offsets = [0, 0], sizes = [8, 640], strides = [1, 1]} : vector<8x768xf32> to vector<8x640xf32>
    %20 = vector.broadcast %18 : vector<8x1xf32> to vector<8x640xf32>
    %21 = arith.mulf %20, %19 : vector<8x640xf32>
    %c767_i32 = arith.constant 767 : i32
    %22 = tpu.dynamic_rotate %9 by %c767_i32 dim 1 : vector<8x768xf32>, i32 -> vector<8x768xf32>
    %23 = vector.extract_strided_slice %22 {offsets = [0, 0], sizes = [8, 640], strides = [1, 1]} : vector<8x768xf32> to vector<8x640xf32>
    %24 = vector.extract_strided_slice %11 {offsets = [0, 1], sizes = [8, 1], strides = [1, 1]} : vector<8x9xf32> to vector<8x1xf32>
    %25 = vector.broadcast %24 : vector<8x1xf32> to vector<8x640xf32>
    %26 = arith.mulf %25, %23 : vector<8x640xf32>
    %27 = arith.addf %15, %26 : vector<8x640xf32>
    %28 = vector.extract_strided_slice %17 {offsets = [0, 1], sizes = [8, 1], strides = [1, 1]} : vector<8x9xf32> to vector<8x1xf32>
    %29 = vector.broadcast %28 : vector<8x1xf32> to vector<8x640xf32>
    %30 = arith.mulf %29, %23 : vector<8x640xf32>
    %31 = arith.addf %21, %30 : vector<8x640xf32>
    %c766_i32 = arith.constant 766 : i32
    %32 = tpu.dynamic_rotate %9 by %c766_i32 dim 1 : vector<8x768xf32>, i32 -> vector<8x768xf32>
    %33 = vector.extract_strided_slice %32 {offsets = [0, 0], sizes = [8, 640], strides = [1, 1]} : vector<8x768xf32> to vector<8x640xf32>
    %34 = vector.extract_strided_slice %11 {offsets = [0, 2], sizes = [8, 1], strides = [1, 1]} : vector<8x9xf32> to vector<8x1xf32>
    %35 = vector.broadcast %34 : vector<8x1xf32> to vector<8x640xf32>
    %36 = arith.mulf %35, %33 : vector<8x640xf32>
    %37 = arith.addf %27, %36 : vector<8x640xf32>
    %38 = vector.extract_strided_slice %17 {offsets = [0, 2], sizes = [8, 1], strides = [1, 1]} : vector<8x9xf32> to vector<8x1xf32>
    %39 = vector.broadcast %38 : vector<8x1xf32> to vector<8x640xf32>
    %40 = arith.mulf %39, %33 : vector<8x640xf32>
    %41 = arith.addf %31, %40 : vector<8x640xf32>
    %c765_i32 = arith.constant 765 : i32
    %42 = tpu.dynamic_rotate %9 by %c765_i32 dim 1 : vector<8x768xf32>, i32 -> vector<8x768xf32>
    %43 = vector.extract_strided_slice %42 {offsets = [0, 0], sizes = [8, 640], strides = [1, 1]} : vector<8x768xf32> to vector<8x640xf32>
    %44 = vector.extract_strided_slice %11 {offsets = [0, 3], sizes = [8, 1], strides = [1, 1]} : vector<8x9xf32> to vector<8x1xf32>
    %45 = vector.broadcast %44 : vector<8x1xf32> to vector<8x640xf32>
    %46 = arith.mulf %45, %43 : vector<8x640xf32>
    %47 = arith.addf %37, %46 : vector<8x640xf32>
    %48 = vector.extract_strided_slice %17 {offsets = [0, 3], sizes = [8, 1], strides = [1, 1]} : vector<8x9xf32> to vector<8x1xf32>
    %49 = vector.broadcast %48 : vector<8x1xf32> to vector<8x640xf32>
    %50 = arith.mulf %49, %43 : vector<8x640xf32>
    %51 = arith.addf %41, %50 : vector<8x640xf32>
    %c764_i32 = arith.constant 764 : i32
    %52 = tpu.dynamic_rotate %9 by %c764_i32 dim 1 : vector<8x768xf32>, i32 -> vector<8x768xf32>
    %53 = vector.extract_strided_slice %52 {offsets = [0, 0], sizes = [8, 640], strides = [1, 1]} : vector<8x768xf32> to vector<8x640xf32>
    %54 = vector.extract_strided_slice %11 {offsets = [0, 4], sizes = [8, 1], strides = [1, 1]} : vector<8x9xf32> to vector<8x1xf32>
    %55 = vector.broadcast %54 : vector<8x1xf32> to vector<8x640xf32>
    %56 = arith.mulf %55, %53 : vector<8x640xf32>
    %57 = arith.addf %47, %56 : vector<8x640xf32>
    %58 = vector.extract_strided_slice %17 {offsets = [0, 4], sizes = [8, 1], strides = [1, 1]} : vector<8x9xf32> to vector<8x1xf32>
    %59 = vector.broadcast %58 : vector<8x1xf32> to vector<8x640xf32>
    %60 = arith.mulf %59, %53 : vector<8x640xf32>
    %61 = arith.addf %51, %60 : vector<8x640xf32>
    %c763_i32 = arith.constant 763 : i32
    %62 = tpu.dynamic_rotate %9 by %c763_i32 dim 1 : vector<8x768xf32>, i32 -> vector<8x768xf32>
    %63 = vector.extract_strided_slice %62 {offsets = [0, 0], sizes = [8, 640], strides = [1, 1]} : vector<8x768xf32> to vector<8x640xf32>
    %64 = vector.extract_strided_slice %11 {offsets = [0, 5], sizes = [8, 1], strides = [1, 1]} : vector<8x9xf32> to vector<8x1xf32>
    %65 = vector.broadcast %64 : vector<8x1xf32> to vector<8x640xf32>
    %66 = arith.mulf %65, %63 : vector<8x640xf32>
    %67 = arith.addf %57, %66 : vector<8x640xf32>
    %68 = vector.extract_strided_slice %17 {offsets = [0, 5], sizes = [8, 1], strides = [1, 1]} : vector<8x9xf32> to vector<8x1xf32>
    %69 = vector.broadcast %68 : vector<8x1xf32> to vector<8x640xf32>
    %70 = arith.mulf %69, %63 : vector<8x640xf32>
    %71 = arith.addf %61, %70 : vector<8x640xf32>
    %c762_i32 = arith.constant 762 : i32
    %72 = tpu.dynamic_rotate %9 by %c762_i32 dim 1 : vector<8x768xf32>, i32 -> vector<8x768xf32>
    %73 = vector.extract_strided_slice %72 {offsets = [0, 0], sizes = [8, 640], strides = [1, 1]} : vector<8x768xf32> to vector<8x640xf32>
    %74 = vector.extract_strided_slice %11 {offsets = [0, 6], sizes = [8, 1], strides = [1, 1]} : vector<8x9xf32> to vector<8x1xf32>
    %75 = vector.broadcast %74 : vector<8x1xf32> to vector<8x640xf32>
    %76 = arith.mulf %75, %73 : vector<8x640xf32>
    %77 = arith.addf %67, %76 : vector<8x640xf32>
    %78 = vector.extract_strided_slice %17 {offsets = [0, 6], sizes = [8, 1], strides = [1, 1]} : vector<8x9xf32> to vector<8x1xf32>
    %79 = vector.broadcast %78 : vector<8x1xf32> to vector<8x640xf32>
    %80 = arith.mulf %79, %73 : vector<8x640xf32>
    %81 = arith.addf %71, %80 : vector<8x640xf32>
    %c761_i32 = arith.constant 761 : i32
    %82 = tpu.dynamic_rotate %9 by %c761_i32 dim 1 : vector<8x768xf32>, i32 -> vector<8x768xf32>
    %83 = vector.extract_strided_slice %82 {offsets = [0, 0], sizes = [8, 640], strides = [1, 1]} : vector<8x768xf32> to vector<8x640xf32>
    %84 = vector.extract_strided_slice %11 {offsets = [0, 7], sizes = [8, 1], strides = [1, 1]} : vector<8x9xf32> to vector<8x1xf32>
    %85 = vector.broadcast %84 : vector<8x1xf32> to vector<8x640xf32>
    %86 = arith.mulf %85, %83 : vector<8x640xf32>
    %87 = arith.addf %77, %86 : vector<8x640xf32>
    %88 = vector.extract_strided_slice %17 {offsets = [0, 7], sizes = [8, 1], strides = [1, 1]} : vector<8x9xf32> to vector<8x1xf32>
    %89 = vector.broadcast %88 : vector<8x1xf32> to vector<8x640xf32>
    %90 = arith.mulf %89, %83 : vector<8x640xf32>
    %91 = arith.addf %81, %90 : vector<8x640xf32>
    %c760_i32 = arith.constant 760 : i32
    %92 = tpu.dynamic_rotate %9 by %c760_i32 dim 1 : vector<8x768xf32>, i32 -> vector<8x768xf32>
    %93 = vector.extract_strided_slice %92 {offsets = [0, 0], sizes = [8, 640], strides = [1, 1]} : vector<8x768xf32> to vector<8x640xf32>
    %94 = vector.extract_strided_slice %11 {offsets = [0, 8], sizes = [8, 1], strides = [1, 1]} : vector<8x9xf32> to vector<8x1xf32>
    %95 = vector.broadcast %94 : vector<8x1xf32> to vector<8x640xf32>
    %96 = arith.mulf %95, %93 : vector<8x640xf32>
    %97 = arith.addf %87, %96 : vector<8x640xf32>
    %98 = vector.extract_strided_slice %17 {offsets = [0, 8], sizes = [8, 1], strides = [1, 1]} : vector<8x9xf32> to vector<8x1xf32>
    %99 = vector.broadcast %98 : vector<8x1xf32> to vector<8x640xf32>
    %100 = arith.mulf %99, %93 : vector<8x640xf32>
    %101 = arith.addf %91, %100 : vector<8x640xf32>
    %c4_i32 = arith.constant 4 : i32
    %102 = tpu.dynamic_rotate %101 by %c4_i32 dim 0 : vector<8x640xf32>, i32 -> vector<8x640xf32>
    %103 = arith.addf %97, %102 : vector<8x640xf32>
    %cst = arith.constant 0.636619746 : f32
    %104 = vector.broadcast %cst : f32 to vector<8x640xf32>
    %105 = arith.mulf %103, %104 : vector<8x640xf32>
    %cst_12 = arith.constant 5.000000e-01 : f32
    %106 = vector.broadcast %cst_12 : f32 to vector<8x640xf32>
    %107 = arith.addf %105, %106 : vector<8x640xf32>
    %108 = math.floor %107 : vector<8x640xf32>
    %109 = arith.fptosi %108 : vector<8x640xf32> to vector<8x640xi32>
    %cst_13 = arith.constant 1.57079637 : f32
    %110 = vector.broadcast %cst_13 : f32 to vector<8x640xf32>
    %111 = arith.mulf %108, %110 : vector<8x640xf32>
    %112 = arith.subf %103, %111 : vector<8x640xf32>
    %cst_14 = arith.constant -4.37113883E-8 : f32
    %113 = vector.broadcast %cst_14 : f32 to vector<8x640xf32>
    %114 = arith.mulf %108, %113 : vector<8x640xf32>
    %115 = arith.subf %112, %114 : vector<8x640xf32>
    %116 = arith.mulf %115, %115 : vector<8x640xf32>
    %117 = arith.mulf %115, %116 : vector<8x640xf32>
    %cst_15 = arith.constant -1.95152956E-4 : f32
    %118 = vector.broadcast %cst_15 : f32 to vector<8x640xf32>
    %119 = arith.mulf %116, %118 : vector<8x640xf32>
    %cst_16 = arith.constant 0.00833216123 : f32
    %120 = vector.broadcast %cst_16 : f32 to vector<8x640xf32>
    %121 = arith.addf %120, %119 : vector<8x640xf32>
    %122 = arith.mulf %116, %121 : vector<8x640xf32>
    %cst_17 = arith.constant -0.166666552 : f32
    %123 = vector.broadcast %cst_17 : f32 to vector<8x640xf32>
    %124 = arith.addf %123, %122 : vector<8x640xf32>
    %125 = arith.mulf %117, %124 : vector<8x640xf32>
    %126 = arith.addf %115, %125 : vector<8x640xf32>
    %cst_18 = arith.constant 5.000000e-01 : f32
    %127 = vector.broadcast %cst_18 : f32 to vector<8x640xf32>
    %128 = arith.mulf %127, %116 : vector<8x640xf32>
    %cst_19 = arith.constant 1.000000e+00 : f32
    %129 = vector.broadcast %cst_19 : f32 to vector<8x640xf32>
    %130 = arith.subf %129, %128 : vector<8x640xf32>
    %131 = arith.mulf %116, %116 : vector<8x640xf32>
    %cst_20 = arith.constant 2.44331568E-5 : f32
    %132 = vector.broadcast %cst_20 : f32 to vector<8x640xf32>
    %133 = arith.mulf %116, %132 : vector<8x640xf32>
    %cst_21 = arith.constant -0.00138873165 : f32
    %134 = vector.broadcast %cst_21 : f32 to vector<8x640xf32>
    %135 = arith.addf %134, %133 : vector<8x640xf32>
    %136 = arith.mulf %116, %135 : vector<8x640xf32>
    %cst_22 = arith.constant 0.0416666456 : f32
    %137 = vector.broadcast %cst_22 : f32 to vector<8x640xf32>
    %138 = arith.addf %137, %136 : vector<8x640xf32>
    %139 = arith.mulf %131, %138 : vector<8x640xf32>
    %140 = arith.addf %130, %139 : vector<8x640xf32>
    %c1_i32 = arith.constant 1 : i32
    %141 = vector.broadcast %c1_i32 : i32 to vector<8x640xi32>
    %142 = arith.andi %109, %141 : vector<8x640xi32>
    %c1_i32_23 = arith.constant 1 : i32
    %143 = vector.broadcast %c1_i32_23 : i32 to vector<8x640xi32>
    %144 = arith.cmpi eq, %142, %143 : vector<8x640xi32>
    %145 = arith.select %144, %140, %126 : vector<8x640xi1>, vector<8x640xf32>
    %146 = arith.select %144, %126, %140 : vector<8x640xi1>, vector<8x640xf32>
    %c2_i32 = arith.constant 2 : i32
    %147 = vector.broadcast %c2_i32 : i32 to vector<8x640xi32>
    %148 = arith.andi %109, %147 : vector<8x640xi32>
    %c0_i32 = arith.constant 0 : i32
    %149 = vector.broadcast %c0_i32 : i32 to vector<8x640xi32>
    %150 = arith.cmpi eq, %148, %149 : vector<8x640xi32>
    %cst_24 = arith.constant 0.000000e+00 : f32
    %151 = vector.broadcast %cst_24 : f32 to vector<8x640xf32>
    %152 = arith.subf %151, %145 : vector<8x640xf32>
    %153 = arith.select %150, %145, %152 : vector<8x640xi1>, vector<8x640xf32>
    %c1_i32_25 = arith.constant 1 : i32
    %154 = vector.broadcast %c1_i32_25 : i32 to vector<8x640xi32>
    %155 = arith.addi %109, %154 : vector<8x640xi32>
    %c2_i32_26 = arith.constant 2 : i32
    %156 = vector.broadcast %c2_i32_26 : i32 to vector<8x640xi32>
    %157 = arith.andi %155, %156 : vector<8x640xi32>
    %c0_i32_27 = arith.constant 0 : i32
    %158 = vector.broadcast %c0_i32_27 : i32 to vector<8x640xi32>
    %159 = arith.cmpi eq, %157, %158 : vector<8x640xi32>
    %cst_28 = arith.constant 0.000000e+00 : f32
    %160 = vector.broadcast %cst_28 : f32 to vector<8x640xf32>
    %161 = arith.subf %160, %146 : vector<8x640xf32>
    %162 = arith.select %159, %146, %161 : vector<8x640xi1>, vector<8x640xf32>
    %c764_i32_29 = arith.constant 764 : i32
    %163 = tpu.dynamic_rotate %4 by %c764_i32_29 dim 1 : vector<16x768xf32>, i32 -> vector<16x768xf32>
    %164 = vector.extract_strided_slice %163 {offsets = [0, 0], sizes = [16, 640], strides = [1, 1]} : vector<16x768xf32> to vector<16x640xf32>
    %165 = vector.extract_strided_slice %164 {offsets = [0, 0], sizes = [8, 640], strides = [1, 1]} : vector<16x640xf32> to vector<8x640xf32>
    %166 = vector.extract_strided_slice %164 {offsets = [8, 0], sizes = [8, 640], strides = [1, 1]} : vector<16x640xf32> to vector<8x640xf32>
    %167 = arith.mulf %165, %162 : vector<8x640xf32>
    %168 = arith.mulf %166, %153 : vector<8x640xf32>
    %169 = arith.subf %167, %168 : vector<8x640xf32>
    %c0_30 = arith.constant 0 : index
    %c0_31 = arith.constant 0 : index
    %c0_32 = arith.constant 0 : index
    %170 = vector.load %arg5[%c0_30, %c0_31, %c0_32] : memref<1x16x640xf32, #tpu.memory_space<vmem>>, vector<1x8x640xf32>
    %171 = vector.shape_cast %170 : vector<1x8x640xf32> to vector<8x640xf32>
    %172 = vector.shape_cast %169 : vector<8x640xf32> to vector<1x8x640xf32>
    tpu.vector_store %arg5[%c0_30, %c0_31, %c0_32], %172 {strides = array<i32>} : memref<1x16x640xf32, #tpu.memory_space<vmem>>, vector<1x8x640xf32>,
    %173 = arith.mulf %165, %153 : vector<8x640xf32>
    %174 = arith.mulf %166, %162 : vector<8x640xf32>
    %175 = arith.addf %173, %174 : vector<8x640xf32>
    %c0_33 = arith.constant 0 : index
    %c8 = arith.constant 8 : index
    %c0_34 = arith.constant 0 : index
    %176 = vector.load %arg5[%c0_33, %c8, %c0_34] : memref<1x16x640xf32, #tpu.memory_space<vmem>>, vector<1x8x640xf32>
    %177 = vector.shape_cast %176 : vector<1x8x640xf32> to vector<8x640xf32>
    %178 = vector.shape_cast %175 : vector<8x640xf32> to vector<1x8x640xf32>
    tpu.vector_store %arg5[%c0_33, %c8, %c0_34], %178 {strides = array<i32>} : memref<1x16x640xf32, #tpu.memory_space<vmem>>, vector<1x8x640xf32>,
    return
  }
  func.func @transform_0(%arg0: i32, %arg1: i32) -> (i32, i32, i32, i32) {
    %c0_i32 = arith.constant 0 : i32
    %c0_i32_0 = arith.constant 0 : i32
    %c0_i32_1 = arith.constant 0 : i32
    %c0_i32_2 = arith.constant 0 : i32
    return %arg0, %c0_i32, %c0_i32_0, %c0_i32_1 : i32, i32, i32, i32
  }
  func.func @transform_1(%arg0: i32, %arg1: i32) -> (i32, i32, i32) {
    %c0_i32 = arith.constant 0 : i32
    %c0_i32_0 = arith.constant 0 : i32
    return %arg0, %c0_i32, %arg1 : i32, i32, i32
  }
  func.func @transform_2(%arg0: i32, %arg1: i32) -> (i32, i32, i32) {
    %c1_i32 = arith.constant 1 : i32
    %0 = arith.addi %arg1, %c1_i32 : i32
    %c5_i32 = arith.constant 5 : i32
    %1 = arith.muli %0, %c5_i32 : i32
    %c0_i32 = arith.constant 0 : i32
    %c0_i32_0 = arith.constant 0 : i32
    return %arg0, %c0_i32, %1 : i32, i32, i32
  }
  func.func @transform_3(%arg0: i32, %arg1: i32) -> (i32, i32, i32) {
    %c0_i32 = arith.constant 0 : i32
    %c0_i32_0 = arith.constant 0 : i32
    return %arg0, %c0_i32, %arg1 : i32, i32, i32
  }
}

</mosaic_0001>

<bundles_post_ra>
// kernel: tpu_custom_call.1
= control target key start
LH: loop header
LB: loop body
LE: loop exit
PB: predicated region body
PF: predicated region fallthrough
CT: control target
= control target key end

     0   :  { %s2340_s0 = inlined_call_operand.hbm [shape: f32[2,2,8,9], index: 0, kind: input, shape index: {}]   ;;  %s2341_s1 = inlined_call_operand.hbm [shape: f32[2,16,768], index: 1, kind: input, shape index: {}]   ;;  %s2342_s2 = inlined_call_operand.hbm [shape: f32[2,16,768], index: 2, kind: input, shape index: {}]   ;;  %s2343_s3 = inlined_call_operand.hbm [shape: f32[2,16,640], index: 3, kind: output, shape index: {}]  }
   0x1   :  { %2349 = sst [smem:[#allocation14_spill]] %s2340_s0 }
   0x2   :  { %2350 = sst [smem:[#allocation15_spill]] %s2341_s1 }
   0x3   :  { %8 = vsyncpa [#allocation3], 0 }
   0x4   :  { %10 = vsyncpa [#allocation3 + $0x1], 0 }
   0x5   :  { %11 = vsyncpa [#allocation6], 0 }
   0x6   :  { %13 = vsyncpa [#allocation6 + $0x1], 0 }
   0x7   :  { %14 = vsyncpa [#allocation4], 0 }
   0x8   :  { %16 = vsyncpa [#allocation4 + $0x1], 0  ;;  %s1525_s12 = smov 0   ;;  %s1527_s13 = smov 0  }
   0x9   :  { %s1529_s14 = smov 0   ;;  %s1531_s15 = smov 0  }
   0xa   :  { %s1533_s16 = smov 0   ;;  %s1535_s17 = smov 0  }
   0xb LB: > { %s1556_s18 = sadd.s32 4294967295, %s1475_s17   ;;  %s1156_s19 = sadd.s32 4294967294, %s1475_s17   ;;  %s1475_s17 = sphi %s1535_s17, %s22_s17   ;;  %s1471_s16 = sphi %s1533_s16, %s2388_s16   ;;  %s1467_s15 = sphi %s1531_s15, %s2387_s15   ;;  %s1463_s14 = sphi %s1529_s14, %s2386_s14   ;;  %s1459_s13 = sphi %s1527_s13, %s2385_s13   ;;  %s1455_s12 = sphi %s1525_s12, %s2384_s12  }
   0xc   : > { %s34_s20 = sadd.s32 1, %s1471_s16  ;;  %s41_s21 = sadd.s32 1, %s1463_s14 }
   0xd   : > { %p36_p0 = scmp.ge.s32.totalorder %s34_s20, 2  ;;  %p48_p1 = scmp.ne.s32.totalorder %s1463_s14, %s1459_s13 }
   0xe   : > { %p49_p2 = scmp.eq.s32.totalorder %s1475_s17, 0  ;;  %p54_p3 = scmp.ne.s32.totalorder %s1459_s13, %s1455_s12 }
   0xf   : > { %s2390_s20 = smov (%p36_p0, %s34_s20), 0  ;;  %p55_p5 = scmp.eq.s32.totalorder %s1556_s18, 0 }
  0x10   : > { %2351 = sst [smem:[#allocation12_spill]] %s2390_s20  ;;  %p1568_p4 = por %p49_p2, %p48_p1 }
  0x11   : > { %s38_s23 = ssub.s32 %s1471_s16, %s2390_s20  ;;  %p140_p6 = scmp.eq.s32.totalorder %s1556_s18, 1 }
  0x12   : > { %p39_p7 = scmp.eq.s32.totalorder %s38_s23, 0  ;;  %p1576_p8 = por %p55_p5, %p54_p3 }
  0x13   : > { %p1580_p9 = por %p140_p6, %p48_p1  ;;  %p146_p10 = scmp.eq.s32.totalorder %s1156_s19, 1 }
  0x14   : > { %s2353_s24 = scalar_select %p1576_p8, 1, 0 }
  0x15   : > { %s2354_s25 = scalar_select %p1580_p9, 1, 0 }
  0x16   : > { %s1585_s26 = scalar_select %p39_p7, %s1463_s14, %s41_s21  }
  0x17   : > { %p1587_p11 = por %p146_p10, %p54_p3  ;;  %p1209_p13 = scmp.lt.s32.totalorder %s1475_s17, 2 }
  0x18   : > { %2355 = sst [smem:[#allocation13_spill]] %s1585_s26  ;;  %s1594_s28 = sand.u32 1, %s1463_s14  }
  0x19   : > { %s2356_s27 = scalar_select %p1587_p11, 1, 0 }
  0x1a   : > { %s187_s29 = sand.u32 1, %s1475_s17   ;;  %s1173_s30 = smul.u32 80, %s1594_s28 }
  0x1b   : > { %p1600_p0 = pnand %p1209_p13, %p1568_p4  ;;  %s2346_s5 = smul.u32 1536, %s1471_s16 }
  0x1c   : > { %s191_s6 = scalar_lea.vmem [#allocation5], %s1173_s30  ;;  %s2358_s1 = sld [smem:[#allocation15_spill]] }
  0x1d   : > { %s207_s7 = sshll.u32 %s191_s6, 4  ;;  %s1615_s11 = scalar_lea.sflag [#allocation6], %s187_s29  ;;  %s1612_s7 = int_to_ptr.vmem [resolvable:$true] %s207_s7 }
  0x1e   : > { %p1621_p3 = pneg %p1600_p0 }
  0x22   : > { %s1610_s10 = scalar_lea.hbm %s2358_s1, %s2346_s5  ;;  %s1303_s30 = scalar_lea.hbm %s2358_s1, 3072 }
  0x23   : > { %s1298_s19 = scalar_lea.hbm %s1610_s10, 1280  ;;  %p1304_p6 = scmp.lt.u32.totalorder %s1610_s10, %s2358_s1 }
  0x24   : > { %p1299_p2 = scmp.ne.s32.totalorder %s1610_s10, %s1298_s19  ;;  %p1305_p7 = scmp.lt.u32.totalorder %s1303_s30, %s1298_s19 }
  0x25   : > { %p1307_p13 = scmp.lt.u32.totalorder %s1298_s19, %s1610_s10 }
  0x26   : > { %p1301_p4 = pnand %p1621_p3, %p1299_p2  ;;  %p1306_p10 = por %p1305_p7, %p1304_p6 }
  0x28   : > { %p1302_p5 = pneg %p1301_p4  ;;  %p1308_p12 = por %p1307_p13, %p1306_p10 }
  0x2a   : > { %p1309_p1 = pnand %p1308_p12, %p1302_p5 }
  0x2c   : > { %1312 = shalt.err (!%p1309_p1)
}
  0x2d   : > { %s1313_s29 = scalar_lea.vmem %s1612_s7, 1280  ;;  %s1477_s9 = smov [#allocation5]  }
  0x2e   : > { %p1314_p2 = scmp.ne.s32.totalorder %s1612_s7, %s1313_s29  ;;  %s1318_s22 = sshll.u32 %s1477_s9, 4  ;;  %s1319_s22 = int_to_ptr.vmem [resolvable:$false] %s1318_s22 }
  0x2f   : > { %s1320_s23 = scalar_lea.vmem %s1319_s22, 2560  ;;  %p1321_p9 = scmp.lt.s32.totalorder %s1612_s7, %s1319_s22 }
  0x30   : > { %p1316_p4 = pnand %p1314_p2, %p1621_p3  ;;  %p1322_p8 = scmp.lt.s32.totalorder %s1320_s23, %s1313_s29 }
  0x32   : > { %p1317_p11 = pneg %p1316_p4  ;;  %p1323_p6 = por %p1322_p8, %p1321_p9 }
  0x34   : > { %p1324_p7 = pnand %p1323_p6, %p1317_p11 }
  0x36   : > { %1327 = shalt.err (!%p1324_p7)
}
  0x37   : > { %s2347_s19 = smov 768   ;;  %s1479_s30 = smov 640  }
  0x38   : > { %s1480_s6 = smov 40   ;;  %p239_p8 = scmp.lt.s32.totalorder %s1475_s17, 3 }
  0x39   : > { %1201 = dma.hbm_to_vmem [thread:$0]  (!%p1600_p0), %s1610_s10, 1280, %s1612_s7, %s1615_s11, %s2347_s19, %s1479_s30, %s1480_s6  }
  0x3a   : > { %p2360_p9 = scmp.ge.s32.totalorder %s1475_s17, 1  ;;  %s1159_s29 = sshll.u32 %s1594_s28, 4 }
  0x3b   : > { %s1172_s9 = sshll.u32 %s1471_s16, 8  ;;  %s2362_s0 = sld [smem:[#allocation14_spill]] }
  0x3c   : > { %p1649_p11 = pnand %p2360_p9, %p239_p8  ;;  %s170_s1 = scalar_lea.vmem [#allocation2], %s1159_s29 }
  0x3d   : > { %s177_s7 = sshll.u32 %s170_s1, 4  ;;  %s167_s10 = scalar_lea.sflag [#allocation3], %s1594_s28  ;;  %s1662_s7 = int_to_ptr.vmem [resolvable:$true] %s177_s7 }
  0x3e   : > { %s2361_s8 = scalar_select %p1649_p11, 1, 0 }
  0x41   : > { %s1658_s5 = scalar_lea.hbm %s2362_s0, %s1172_s9  ;;  %s1333_s9 = scalar_lea.hbm %s2362_s0, 512 }
  0x42   : > { %s1328_s30 = scalar_lea.hbm %s1658_s5, 256  ;;  %p1334_p10 = scmp.lt.u32.totalorder %s1658_s5, %s2362_s0 }
  0x43   : > { %p1329_p12 = scmp.ne.s32.totalorder %s1658_s5, %s1328_s30  ;;  %p1335_p13 = scmp.lt.u32.totalorder %s1333_s9, %s1328_s30 }
  0x44   : > { %p1337_p4 = scmp.lt.u32.totalorder %s1328_s30, %s1658_s5 }
  0x45   : > { %p1331_p1 = pnand %p1329_p12, %p1621_p3  ;;  %p1336_p2 = por %p1335_p13, %p1334_p10 }
  0x47   : > { %p1332_p5 = pneg %p1331_p1  ;;  %p1338_p6 = por %p1337_p4, %p1336_p2 }
  0x49   : > { %p1339_p7 = pnand %p1338_p6, %p1332_p5 }
  0x4b   : > { %1342 = shalt.err (!%p1339_p7)
}
  0x4c   : > { %s1343_s1 = scalar_lea.vmem %s1662_s7, 256  ;;  %s1481_s19 = smov [#allocation2]  }
  0x4d   : > { %p1344_p8 = scmp.ne.s32.totalorder %s1662_s7, %s1343_s1  ;;  %s1348_s6 = sshll.u32 %s1481_s19, 4  ;;  %s1349_s6 = int_to_ptr.vmem [resolvable:$false] %s1348_s6 }
  0x4e   : > { %s1350_s22 = scalar_lea.vmem %s1349_s6, 512  ;;  %p1351_p1 = scmp.lt.s32.totalorder %s1662_s7, %s1349_s6 }
  0x4f   : > { %p1346_p9 = pnand %p1344_p8, %p1621_p3  ;;  %p1352_p11 = scmp.lt.s32.totalorder %s1350_s22, %s1343_s1 }
  0x51   : > { %p1347_p12 = pneg %p1346_p9  ;;  %p1353_p10 = por %p1352_p11, %p1351_p1 }
  0x53   : > { %p1354_p13 = pnand %p1353_p10, %p1347_p12 }
  0x55   : > { %1357 = shalt.err (!%p1354_p13)
}
  0x56   : > { %s1482_s30 = smov 128   ;;  %s1483_s9 = smov 8  }
  0x57   : > { %1198 = dma.hbm_to_vmem [thread:$0]  (!%p1600_p0), %s1658_s5, 256, %s1662_s7, %s167_s10, %s1482_s30, %s1482_s30, %s1483_s9  }
  0x58   : > { %s221_s23 = scalar_lea.vmem [#allocation7], %s1159_s29  ;;  %s2363_s19 = smul.u32 1536, %s1471_s16 }
  0x59   : > { %s231_s1 = sshll.u32 %s221_s23, 4  ;;  %s1363_s29 = scalar_lea.hbm %s2342_s2, 3072  ;;  %s1698_s1 = int_to_ptr.vmem [resolvable:$true] %s231_s1 }
  0x5a   : > { %s1071_s0 = scalar_lea.hbm %s2342_s2, %s2363_s19 }
  0x5b   : > { %s1700_s20 = scalar_lea.hbm %s1071_s0, 640  ;;  %s1388_s26 = scalar_lea.hbm %s1071_s0, 896 }
  0x5c   : > { %p1359_p11 = scmp.ne.s32.totalorder %s1700_s20, %s1388_s26  ;;  %p1364_p4 = scmp.lt.u32.totalorder %s1700_s20, %s2342_s2 }
  0x5d   : > { %p1365_p6 = scmp.lt.u32.totalorder %s1363_s29, %s1388_s26  ;;  %p1367_p8 = scmp.lt.u32.totalorder %s1388_s26, %s1700_s20 }
  0x5e   : > { %p1361_p5 = pnand %p1359_p11, %p1621_p3 }
  0x5f   : > { %p1366_p7 = por %p1365_p6, %p1364_p4 }
  0x60   : > { %p1362_p2 = pneg %p1361_p5 }
  0x61   : > { %p1368_p9 = por %p1367_p8, %p1366_p7 }
  0x63   : > { %p1369_p12 = pnand %p1368_p9, %p1362_p2 }
  0x65   : > { %1372 = shalt.err (!%p1369_p12)
}
  0x66   : > { %s1373_s0 = scalar_lea.vmem %s1698_s1, 256  ;;  %s1484_s23 = smov [#allocation7]  }
  0x67   : > { %p1374_p1 = scmp.ne.s32.totalorder %s1698_s1, %s1373_s0  ;;  %s1378_s19 = sshll.u32 %s1484_s23, 4  ;;  %s1379_s19 = int_to_ptr.vmem [resolvable:$false] %s1378_s19 }
  0x68   : > { %s1380_s6 = scalar_lea.vmem %s1379_s19, 512  ;;  %p1381_p11 = scmp.lt.s32.totalorder %s1698_s1, %s1379_s19 }
  0x69   : > { %p1376_p10 = pnand %p1374_p1, %p1621_p3  ;;  %p1382_p5 = scmp.lt.s32.totalorder %s1380_s6, %s1373_s0 }
  0x6b   : > { %p1377_p13 = pneg %p1376_p10  ;;  %p1383_p4 = por %p1382_p5, %p1381_p11 }
  0x6d   : > { %p1384_p6 = pnand %p1383_p4, %p1377_p13 }
  0x6f   : > { %1387 = shalt.err (!%p1384_p6)
}
  0x70   : > { %s2364_s26 = smov 768   ;;  %p2365_p3 = scmp.ne.s32.totalorder %s2361_s8, 0 }
  0x71   : > { %1204 = dma.hbm_to_vmem [thread:$0]  (!%p1600_p0), %s1700_s20, 256, %s1698_s1, %s1615_s11, %s2364_s26, %s1482_s30, %s1483_s9  }
  0x72   : > { %243 = sbr.rel (%p2365_p3) target bundleno = 487 (0x1e7), region = 32  ;;  %s1729_s21 = sand.u32 (!%p2365_p3), 1, %s1459_s13  }
  0x73   : > { %s1166_s22 = sshll.u32 (!%p2365_p3), %s1729_s21, 4  ;;  %s246_s28 = scalar_lea.sflag (!%p2365_p3), [#allocation3], %s1729_s21 }
  0x74   : > { %s249_s4 = scalar_lea.vmem (!%p2365_p3), [#allocation2], %s1166_s22  ;;  %p2366_p2 = scmp.ne.s32.totalorder (!%p2365_p3), %s2353_s24, 0 }
  0x79   : > { %1442 = dma.done.wait (%p2366_p2), %s246_s28, 256  }
  0x7a   : > { %1444 = vsyncadd (%p2366_p2), %s246_s28, 4294967040  ;;  %s254_s20 = sand.u32 1, %s1556_s18   ;;  %s1175_s11 = smul.u32 80, %s1729_s21 }
  0x7b   : > { %s255_s8 = scalar_lea.sflag [#allocation6], %s254_s20 }
  0x7c   : > { %s258_s30 = scalar_lea.vmem [#allocation5], %s1175_s11 }
  0x7d   : > { %1446 = dma.done.wait (%p2366_p2), %s255_s8, 1536  }
  0x7e   : > { %1448 = vsyncadd (%p2366_p2), %s255_s8, 4294965760  ;;  %v1485_v0 = vmov 0   ;;  %v1486_v1 = vmov 1   ;;  %v1747_v2 = vld [vmem:[%s249_s4] sm:$0xff]  ;;  %v1749_v3 = vld [vmem:[%s249_s4 + $0x8] sm:$0xff]  ;;  %s1487_s18 = smov 127   ;;  %v373_v41 = vlaneseq }
  0x7f   : > { %1283 = vset.pattern.permute.xlu0 %v1485_v0  ;;  %1285 = vset.pattern.permute.xlu1 %v1486_v1  ;;  %v1751_v4 = vld [vmem:[%s258_s30] sm:$0xff]  ;;  %v1754_v5 = vld [vmem:[%s258_s30 + $0x28] sm:$0xff]  ;;  %v1758_v7 = vld [vmem:[%s258_s30 + $0x10] sm:$0xff]  ;;  %s267_s24 = scalar_lea.vmem [#allocation7], %s1166_s22  ;;  %s1488_s9 = smov 126   ;;  %v1489_v34 = vmov 2  }
  0x80   : > { %341 = vperm.xlu0 %1283, %v1747_v2   ;;  %v320_v6 = vmul.f32 %v1751_v4, %v1751_v4  ;;  %v1760_v8 = vld [vmem:[%s258_s30 + $0x38] sm:$0xff]  ;;  %v326_v9 = vmul.f32 %v1754_v5, %v1754_v5  ;;  %v322_v10 = vmul.f32 %v1758_v7, %v1758_v7  ;;  %v1768_v12 = vld [vmem:[%s258_s30 + $0x8] sm:$0xff]  ;;  %v1770_v13 = vld [vmem:[%s258_s30 + $0x30] sm:$0xff]  ;;  %s1490_s1 = smov 125   ;;  %v1491_v35 = vmov 3   ;;  %s1492_s5 = smov 124  }
  0x81   : > { %v328_v11 = vmul.f32 %v1760_v8, %v1760_v8  ;;  %v1772_v14 = vld [vmem:[%s258_s30 + $0x20] sm:$0xff]  ;;  %v321_v15 = vmul.f32 %v1768_v12, %v1768_v12  ;;  %v327_v16 = vmul.f32 %v1770_v13, %v1770_v13  ;;  %v1778_v17 = vld [vmem:[%s258_s30 + $0x48] sm:$0xff]  ;;  %v1780_v18 = vld [vmem:[%s258_s30 + $0x18] sm:$0xff]  ;;  %v1493_v36 = vmov 4   ;;  %s1495_s29 = smov 123   ;;  %s1498_s7 = smov 122  }
  0x82   : > { %v1782_v19 = vld [vmem:[%s258_s30 + $0x40] sm:$0xff]  ;;  %v1784_v20 = vadd.f32 %v326_v9, %v320_v6  ;;  %v324_v22 = vmul.f32 %v1772_v14, %v1772_v14  ;;  %v330_v23 = vmul.f32 %v1778_v17, %v1778_v17  ;;  %v323_v25 = vmul.f32 %v1780_v18, %v1780_v18  ;;  %v1804_v28 = vld [vmem:[%s267_s24 + $0x8] sm:$0xff]  ;;  %s1500_s10 = smov 121   ;;  %s1501_s0 = smov 120  }
  0x83   : > { %v1787_v21 = vadd.f32 %v328_v11, %v322_v10  ;;  %v1794_v24 = vadd.f32 %v327_v16, %v321_v15  ;;  %v329_v26 = vmul.f32 %v1782_v19, %v1782_v19  ;;  %v1802_v27 = vld [vmem:[%s267_s24] sm:$0xff]  ;;  %v331_v32 = vmul.f32 %v1804_v28, %v1804_v28  ;;  %s2209_s23 = scalar_lea.vmem [#allocation8], %s1175_s11  ;;  %s1186_s19 = smul.u32 1280, %s1467_s15 }
  0x84   : > { %353 = vperm.xlu0 %1283, %v1749_v3   ;;  %361 = vrot.lane.b32.xlu1 %v1784_v20, %s1487_s18  ;;  %v1807_v29 = vadd.f32 %v330_v23, %v324_v22  ;;  %v325_v31 = vmul.f32 %v1802_v27, %v1802_v27  ;;  %v1494_v37 = vmov 6   ;;  %v1496_v38 = vmov 7   ;;  %s1021_s6 = sshll.u32 %s2209_s23, 4  ;;  %s1006_s28 = scalar_lea.sflag [#allocation4], %s1729_s21  ;;  %s2289_s6 = int_to_ptr.vmem [resolvable:$true] %s1021_s6 }
  0x85   : > { %v1810_v30 = vadd.f32 %v329_v26, %v323_v25  ;;  %v1497_v39 = vmov 5   ;;  %v1499_v40 = vmov 8   ;;  %v1881_v42 = vand.u32 127, %v373_v41  ;;  %s2287_s22 = scalar_lea.hbm %s2343_s3, %s1186_s19  ;;  %s1389_s4 = scalar_lea.vmem %s2289_s6, 1280 }
  0x86   : > { %v1818_v33 = vadd.f32 %v331_v32, %v325_v31  ;;  %p1390_p0 = scmp.ne.s32.totalorder %s2289_s6, %s1389_s4  ;;  %p2379_p7 = scmp.ne.s32.totalorder %s2354_s25, 0 }
  0x87   : > { %vm375_vm0 = vcmp.lt.s32.totalorder %v1881_v42, 127  ;;  %vm421_vm1 = vcmp.lt.s32.totalorder %v1881_v42, 126  ;;  %vm467_vm2 = vcmp.lt.s32.totalorder %v1881_v42, 125  ;;  %vm513_vm3 = vcmp.lt.s32.totalorder %v1881_v42, 124  ;;  %s1502_s20 = smov [#allocation8]  }
  0x88   : > { %365 = vrot.lane.b32.xlu0 %v1787_v21, %s1487_s18  ;;  %363 = vrot.lane.b32.xlu1 %v1794_v24, %s1487_s18  ;;  %vm559_vm4 = vcmp.lt.s32.totalorder %v1881_v42, 123  ;;  %vm605_vm5 = vcmp.lt.s32.totalorder %v1881_v42, 122  ;;  %vm651_vm6 = vcmp.lt.s32.totalorder %v1881_v42, 121  ;;  %vm697_vm7 = vcmp.lt.s32.totalorder %v1881_v42, 120  ;;  %p1391_p8 = pnand %p1390_p0, %p2379_p7  ;;  %s1393_s11 = sshll.u32 %s1502_s20, 4  ;;  %s1394_s11 = int_to_ptr.vmem [resolvable:$false] %s1393_s11 }
  0x89   : > { %1284 = vset.pattern.permute.xlu0 %v1486_v1  ;;  %s1395_s8 = scalar_lea.vmem %s1394_s11, 2560  ;;  %p1396_p12 = scmp.lt.s32.totalorder %s2289_s6, %s1394_s11 }
  0x8a   : > { %p1392_p9 = pneg %p1391_p8  ;;  %p1397_p1 = scmp.lt.s32.totalorder %s1395_s8, %s1389_s4 }
  0x8c   : > { %369 = vrot.lane.b32.xlu0 %v1807_v29, %s1487_s18  ;;  %367 = vrot.lane.b32.xlu1 %v1810_v30, %s1487_s18  ;;  %p1398_p10 = por %p1397_p1, %p1396_p12 }
  0x8e   : > { %p1399_p13 = pnand %p1398_p10, %p1392_p9 }
  0x90   : > { %382 = vperm.xlu0 %1284, %v1747_v2   ;;  %371 = vrot.lane.b32.xlu1 %v1818_v33, %s1487_s18 }
  0x94   : > { %411 = vrot.lane.b32.xlu0 %v1794_v24, %s1488_s9  ;;  %396 = vperm.xlu1 %1285, %v1749_v3  }
  0x95   : > { %1287 = vset.pattern.permute.xlu0 %v1489_v34 }
  0x98   : > { %415 = vrot.lane.b32.xlu0 %v1810_v30, %s1488_s9  ;;  %409 = vrot.lane.b32.xlu1 %v1784_v20, %s1488_s9 }
  0x99   : > { %1286 = vset.pattern.permute.xlu1 %v1489_v34 }
  0x9c   : > { %419 = vrot.lane.b32.xlu0 %v1818_v33, %s1488_s9  ;;  %413 = vrot.lane.b32.xlu1 %v1787_v21, %s1488_s9 }
  0xa0   : > { %442 = vperm.xlu0 %1287, %v1749_v3   ;;  %417 = vrot.lane.b32.xlu1 %v1807_v29, %s1488_s9 }
  0xa4   : > { %459 = vrot.lane.b32.xlu0 %v1787_v21, %s1490_s1  ;;  %428 = vperm.xlu1 %1286, %v1747_v2  }
  0xa5   : > { %1288 = vset.pattern.permute.xlu0 %v1491_v35 }
  0xa8   : > { %463 = vrot.lane.b32.xlu0 %v1807_v29, %s1490_s1  ;;  %455 = vrot.lane.b32.xlu1 %v1784_v20, %s1490_s1 }
  0xa9   : > { %1289 = vset.pattern.permute.xlu1 %v1491_v35 }
  0xac   : > { %474 = vperm.xlu0 %1288, %v1747_v2   ;;  %457 = vrot.lane.b32.xlu1 %v1794_v24, %s1490_s1 }
  0xb0   : > { %503 = vrot.lane.b32.xlu0 %v1794_v24, %s1492_s5  ;;  %461 = vrot.lane.b32.xlu1 %v1810_v30, %s1490_s1 }
  0xb1   : > { %1291 = vset.pattern.permute.xlu0 %v1493_v36 }
  0xb4   : > { %507 = vrot.lane.b32.xlu0 %v1810_v30, %s1492_s5  ;;  %465 = vrot.lane.b32.xlu1 %v1818_v33, %s1490_s1 }
  0xb8   : > { %520 = vperm.xlu0 %1291, %v1747_v2   ;;  %488 = vperm.xlu1 %1289, %v1749_v3  }
  0xbc   : > { %1293 = vset.pattern.permute.xlu0 %v1494_v37  ;;  %501 = vrot.lane.b32.xlu1 %v1784_v20, %s1492_s5 }
  0xbd   : > { %626 = vperm.xlu0 %1293, %v1749_v3   ;;  %1290 = vset.pattern.permute.xlu1 %v1493_v36 }
  0xc0   : > { %505 = vrot.lane.b32.xlu1 %v1787_v21, %s1492_s5 }
  0xc1   : > { %612 = vperm.xlu0 %1293, %v1747_v2  }
  0xc4   : > { %534 = vperm.xlu1 %1290, %v1749_v3  }
  0xc5   : > { %547 = vrot.lane.b32.xlu0 %v1784_v20, %s1495_s29 }
  0xc6   : > { %1295 = vset.pattern.permute.xlu0 %v1496_v38 }
  0xc8   : > { %1292 = vset.pattern.permute.xlu1 %v1497_v39 }
  0xc9   : > { %551 = vrot.lane.b32.xlu0 %v1787_v21, %s1495_s29  ;;  %580 = vperm.xlu1 %1292, %v1749_v3  }
  0xcd   : > { %555 = vrot.lane.b32.xlu0 %v1807_v29, %s1495_s29  ;;  %566 = vperm.xlu1 %1292, %v1747_v2  }
  0xd1   : > { %658 = vperm.xlu0 %1295, %v1747_v2   ;;  %509 = vrot.lane.b32.xlu1 %v1807_v29, %s1492_s5 }
  0xd2   : > { %1294 = vset.pattern.permute.xlu1 %v1496_v38 }
  0xd5   : > { %595 = vrot.lane.b32.xlu0 %v1794_v24, %s1498_s7  ;;  %511 = vrot.lane.b32.xlu1 %v1818_v33, %s1492_s5 }
  0xd6   : > { %1297 = vset.pattern.permute.xlu0 %v1499_v40 }
  0xd9   : > { %599 = vrot.lane.b32.xlu0 %v1810_v30, %s1498_s7  ;;  %672 = vperm.xlu1 %1294, %v1749_v3  }
  0xdd   : > { %603 = vrot.lane.b32.xlu0 %v1818_v33, %s1498_s7  ;;  %549 = vrot.lane.b32.xlu1 %v1794_v24, %s1495_s29 }
  0xde   : > { %1296 = vset.pattern.permute.xlu1 %v1499_v40 }
  0xe1   : > { %639 = vrot.lane.b32.xlu0 %v1784_v20, %s1500_s10  ;;  %553 = vrot.lane.b32.xlu1 %v1810_v30, %s1495_s29 }
  0xe5   : > { %643 = vrot.lane.b32.xlu0 %v1787_v21, %s1500_s10  ;;  %557 = vrot.lane.b32.xlu1 %v1818_v33, %s1495_s29 }
  0xe9   : > { %647 = vrot.lane.b32.xlu0 %v1807_v29, %s1500_s10  ;;  %718 = vperm.xlu1 %1296, %v1749_v3  }
  0xed   : > { %685 = vrot.lane.b32.xlu0 %v1784_v20, %s1501_s0  ;;  %593 = vrot.lane.b32.xlu1 %v1784_v20, %s1498_s7 }
  0xf1   : > { %689 = vrot.lane.b32.xlu0 %v1787_v21, %s1501_s0  ;;  %597 = vrot.lane.b32.xlu1 %v1787_v21, %s1498_s7 }
  0xf5   : > { %693 = vrot.lane.b32.xlu0 %v1807_v29, %s1501_s0  ;;  %601 = vrot.lane.b32.xlu1 %v1807_v29, %s1498_s7 }
  0xf6   : > { %v362_v43 = vpop.permute.xlu1 %361 }
  0xf9   : > { %931 = vrot.lane.b32.xlu0 %v1751_v4, %s1492_s5  ;;  %704 = vperm.xlu1 %1296, %v1747_v2  }
  0xfa   : > { %v364_v44 = vpop.permute.xlu1 %363 }
  0xfb   : > { %v380_v45 = vsel %vm375_vm0, %v362_v43, %v364_v44 }
  0xfd   : > { %935 = vrot.lane.b32.xlu0 %v1768_v12, %s1492_s5  ;;  %641 = vrot.lane.b32.xlu1 %v1794_v24, %s1500_s10 }
  0xfe   : > { %v368_v48 = vpop.permute.xlu1 %367 }
  0xff   : > { %v342_v46 = vpop.permute.xlu0 %341 }
 0x100   : > { %v344_v56 = vmul.f32 %v342_v46, %v1784_v20  ;;  %v345_v57 = vmul.f32 %v342_v46, %v1794_v24  ;;  %v346_v58 = vmul.f32 %v342_v46, %v1787_v21  ;;  %v347_v59 = vmul.f32 %v342_v46, %v1810_v30 }
 0x101   : > { %939 = vrot.lane.b32.xlu0 %v1758_v7, %s1492_s5  ;;  %645 = vrot.lane.b32.xlu1 %v1810_v30, %s1500_s10  ;;  %v348_v60 = vmul.f32 %v342_v46, %v1807_v29 }
 0x102   : > { %v372_v52 = vpop.permute.xlu1 %371 }
 0x103   : > { %v354_v47 = vpop.permute.xlu0 %353 }
 0x104   : > { %v356_v2 = vmul.f32 %v354_v47, %v1784_v20  ;;  %v357_v10 = vmul.f32 %v354_v47, %v1794_v24  ;;  %v358_v11 = vmul.f32 %v354_v47, %v1787_v21  ;;  %v359_v12 = vmul.f32 %v354_v47, %v1810_v30 }
 0x105   : > { %943 = vrot.lane.b32.xlu0 %v1780_v18, %s1492_s5  ;;  %649 = vrot.lane.b32.xlu1 %v1818_v33, %s1500_s10  ;;  %v360_v16 = vmul.f32 %v354_v47, %v1807_v29 }
 0x107   : > { %v366_v49 = vpop.permute.xlu0 %365 }
 0x108   : > { %v378_v50 = vsel %vm375_vm0, %v366_v49, %v368_v48  ;;  %v379_v51 = vsel %vm375_vm0, %v364_v44, %v366_v49 }
 0x109   : > { %947 = vrot.lane.b32.xlu0 %v1772_v14, %s1492_s5  ;;  %687 = vrot.lane.b32.xlu1 %v1794_v24, %s1501_s0 }
 0x10b   : > { %v370_v53 = vpop.permute.xlu0 %369 }
 0x10c   : > { %v376_v54 = vsel %vm375_vm0, %v370_v53, %v372_v52  ;;  %v377_v55 = vsel %vm375_vm0, %v368_v48, %v370_v53 }
 0x10d   : > { %951 = vrot.lane.b32.xlu0 %v1802_v27, %s1492_s5  ;;  %691 = vrot.lane.b32.xlu1 %v1810_v30, %s1501_s0 }
 0x10f   : > { %v383_v61 = vpop.permute.xlu0 %382 }
 0x110   : > { %v385_v62 = vmul.f32 %v383_v61, %v380_v45  ;;  %v386_v63 = vmul.f32 %v383_v61, %v379_v51  ;;  %v387_v0 = vmul.f32 %v383_v61, %v378_v50  ;;  %v388_v1 = vmul.f32 %v383_v61, %v377_v55 }
 0x111   : > { %v389_v3 = vmul.f32 %v383_v61, %v376_v54  ;;  %695 = vrot.lane.b32.xlu1 %v1818_v33, %s1501_s0 }
 0x112   : > { %v390_v4 = vadd.f32 %v385_v62, %v344_v56  ;;  %v391_v6 = vadd.f32 %v386_v63, %v345_v57  ;;  %v392_v7 = vadd.f32 %v387_v0, %v346_v58  ;;  %v393_v9 = vadd.f32 %v388_v1, %v347_v59 }
 0x113   : > { %v412_v14 = vpop.permute.xlu0 %411  ;;  %v394_v15 = vadd.f32 %v389_v3, %v348_v60  ;;  %v397_v18 = vpop.permute.xlu1 %396 }
 0x114   : > { %v399_v20 = vmul.f32 %v397_v18, %v380_v45  ;;  %v400_v22 = vmul.f32 %v397_v18, %v379_v51  ;;  %v401_v23 = vmul.f32 %v397_v18, %v378_v50  ;;  %v402_v25 = vmul.f32 %v397_v18, %v377_v55 }
 0x115   : > { %v403_v26 = vmul.f32 %v397_v18, %v376_v54  ;;  %933 = vrot.lane.b32.xlu1 %v1754_v5, %s1492_s5 }
 0x116   : > { %v404_v24 = vadd.f32 %v399_v20, %v356_v2  ;;  %v405_v27 = vadd.f32 %v400_v22, %v357_v10  ;;  %v406_v21 = vadd.f32 %v401_v23, %v358_v11  ;;  %v407_v30 = vadd.f32 %v402_v25, %v359_v12 }
 0x117   : > { %v416_v31 = vpop.permute.xlu0 %415  ;;  %v410_v32 = vpop.permute.xlu1 %409  ;;  %v408_v33 = vadd.f32 %v403_v26, %v360_v16 }
 0x118   : > { %v426_v29 = vsel %vm421_vm1, %v410_v32, %v412_v14 }
 0x119   : > { %937 = vrot.lane.b32.xlu1 %v1770_v13, %s1492_s5 }
 0x11b   : > { %v420_v34 = vpop.permute.xlu0 %419  ;;  %v414_v35 = vpop.permute.xlu1 %413 }
 0x11c   : > { %v424_v36 = vsel %vm421_vm1, %v414_v35, %v416_v31  ;;  %v425_v5 = vsel %vm421_vm1, %v412_v14, %v414_v35 }
 0x11d   : > { %941 = vrot.lane.b32.xlu1 %v1760_v8, %s1492_s5 }
 0x11f   : > { %v443_v37 = vpop.permute.xlu0 %442  ;;  %v418_v41 = vpop.permute.xlu1 %417 }
 0x120   : > { %v445_v38 = vmul.f32 %v443_v37, %v426_v29  ;;  %v446_v39 = vmul.f32 %v443_v37, %v425_v5  ;;  %v447_v40 = vmul.f32 %v443_v37, %v424_v36  ;;  %v422_v43 = vsel %vm421_vm1, %v418_v41, %v420_v34 }
 0x121   : > { %v423_v13 = vsel %vm421_vm1, %v416_v31, %v418_v41  ;;  %945 = vrot.lane.b32.xlu1 %v1782_v19, %s1492_s5  ;;  %v449_v48 = vmul.f32 %v443_v37, %v422_v43 }
 0x122   : > { %v450_v44 = vadd.f32 %v445_v38, %v404_v24  ;;  %v451_v45 = vadd.f32 %v446_v39, %v405_v27  ;;  %v452_v46 = vadd.f32 %v447_v40, %v406_v21  ;;  %v448_v47 = vmul.f32 %v443_v37, %v423_v13 }
 0x123   : > { %v460_v8 = vpop.permute.xlu0 %459  ;;  %v429_v50 = vpop.permute.xlu1 %428  ;;  %v454_v51 = vadd.f32 %v449_v48, %v408_v33 }
 0x124   : > { %v453_v49 = vadd.f32 %v448_v47, %v407_v30  ;;  %v431_v52 = vmul.f32 %v429_v50, %v426_v29  ;;  %v432_v53 = vmul.f32 %v429_v50, %v425_v5  ;;  %v433_v54 = vmul.f32 %v429_v50, %v424_v36 }
 0x125   : > { %v434_v55 = vmul.f32 %v429_v50, %v423_v13  ;;  %v435_v56 = vmul.f32 %v429_v50, %v422_v43  ;;  %949 = vrot.lane.b32.xlu1 %v1778_v17, %s1492_s5 }
 0x126   : > { %v436_v57 = vadd.f32 %v431_v52, %v390_v4  ;;  %v438_v59 = vadd.f32 %v433_v54, %v392_v7  ;;  %v437_v60 = vadd.f32 %v432_v53, %v391_v6 }
 0x127   : > { %v464_v58 = vpop.permute.xlu0 %463  ;;  %v456_v61 = vpop.permute.xlu1 %455  ;;  %v439_v62 = vadd.f32 %v434_v55, %v393_v9  ;;  %v440_v19 = vadd.f32 %v435_v56, %v394_v15 }
 0x129   : > { %953 = vrot.lane.b32.xlu1 %v1804_v28, %s1492_s5 }
 0x12b   : > { %v475_v63 = vpop.permute.xlu0 %474  ;;  %v458_v0 = vpop.permute.xlu1 %457 }
 0x12c   : > { %v471_v1 = vsel %vm467_vm2, %v458_v0, %v460_v8  ;;  %v472_v17 = vsel %vm467_vm2, %v456_v61, %v458_v0 }
 0x12d   : > { %v477_v2 = vmul.f32 %v475_v63, %v472_v17  ;;  %v478_v3 = vmul.f32 %v475_v63, %v471_v1 }
 0x12f   : > { %v504_v4 = vpop.permute.xlu0 %503  ;;  %v462_v6 = vpop.permute.xlu1 %461  ;;  %v483_v7 = vadd.f32 %v478_v3, %v437_v60  ;;  %v482_v9 = vadd.f32 %v477_v2, %v436_v57 }
 0x130   : > { %v469_v10 = vsel %vm467_vm2, %v462_v6, %v464_v58  ;;  %v470_v28 = vsel %vm467_vm2, %v460_v8, %v462_v6 }
 0x131   : > { %v479_v11 = vmul.f32 %v475_v63, %v470_v28  ;;  %v480_v12 = vmul.f32 %v475_v63, %v469_v10 }
 0x133   : > { %v508_v14 = vpop.permute.xlu0 %507  ;;  %v484_v15 = vadd.f32 %v479_v11, %v438_v59  ;;  %v485_v16 = vadd.f32 %v480_v12, %v439_v62  ;;  %v466_v18 = vpop.permute.xlu1 %465 }
 0x134   : > { %v468_v20 = vsel %vm467_vm2, %v464_v58, %v466_v18 }
 0x135   : > { %v481_v22 = vmul.f32 %v475_v63, %v468_v20 }
 0x137   : > { %v486_v23 = vadd.f32 %v481_v22, %v440_v19  ;;  %v489_v25 = vpop.permute.xlu1 %488  ;;  %v521_v26 = vpop.permute.xlu0 %520 }
 0x138   : > { %v491_v24 = vmul.f32 %v489_v25, %v472_v17  ;;  %v492_v27 = vmul.f32 %v489_v25, %v471_v1  ;;  %v493_v21 = vmul.f32 %v489_v25, %v470_v28  ;;  %v494_v31 = vmul.f32 %v489_v25, %v469_v10 }
 0x139   : > { %v495_v30 = vmul.f32 %v489_v25, %v468_v20 }
 0x13a   : > { %v499_v32 = vadd.f32 %v494_v31, %v453_v49  ;;  %v497_v33 = vadd.f32 %v492_v27, %v451_v45  ;;  %v496_v29 = vadd.f32 %v491_v24, %v450_v44  ;;  %v498_v34 = vadd.f32 %v493_v21, %v452_v46 }
 0x13b   : > { %v502_v35 = vpop.permute.xlu1 %501  ;;  %v500_v5 = vadd.f32 %v495_v30, %v454_v51 }
 0x13c   : > { %v1967_v36 = vpop.permute.xlu0 %626  ;;  %v518_v37 = vsel %vm513_vm3, %v502_v35, %v504_v4 }
 0x13d   : > { %v523_v38 = vmul.f32 %v521_v26, %v518_v37 }
 0x13f   : > { %v506_v39 = vpop.permute.xlu1 %505  ;;  %v1973_v41 = vadd.f32 %v523_v38, %v482_v9 }
 0x140   : > { %v1971_v40 = vpop.permute.xlu0 %612  ;;  %v516_v43 = vsel %vm513_vm3, %v506_v39, %v508_v14  ;;  %v517_v13 = vsel %vm513_vm3, %v504_v4, %v506_v39 }
 0x141   : > { %v524_v44 = vmul.f32 %v521_v26, %v517_v13  ;;  %v525_v45 = vmul.f32 %v521_v26, %v516_v43 }
 0x143   : > { %v1979_v46 = vadd.f32 %v524_v44, %v483_v7  ;;  %v530_v47 = vadd.f32 %v525_v45, %v484_v15  ;;  %v535_v48 = vpop.permute.xlu1 %534 }
 0x144   : > { %v537_v8 = vmul.f32 %v535_v48, %v518_v37  ;;  %v538_v49 = vmul.f32 %v535_v48, %v517_v13  ;;  %v539_v50 = vmul.f32 %v535_v48, %v516_v43  ;;  %v1981_v51 = vpop.permute.xlu0 %547 }
 0x146   : > { %v543_v52 = vadd.f32 %v538_v49, %v497_v33  ;;  %v1983_v53 = vadd.f32 %v537_v8, %v496_v29  ;;  %v544_v54 = vadd.f32 %v539_v50, %v498_v34 }
 0x148   : > { %v1985_v55 = vpop.permute.xlu1 %580  ;;  %v552_v56 = vpop.permute.xlu0 %551 }
 0x14c   : > { %v1987_v57 = vpop.permute.xlu1 %566  ;;  %v556_v59 = vpop.permute.xlu0 %555 }
 0x150   : > { %v510_v58 = vpop.permute.xlu1 %509  ;;  %v1991_v1 = vpop.permute.xlu0 %658 }
 0x151   : > { %v515_v60 = vsel %vm513_vm3, %v508_v14, %v510_v58 }
 0x152   : > { %v526_v61 = vmul.f32 %v521_v26, %v515_v60  ;;  %v540_v62 = vmul.f32 %v535_v48, %v515_v60 }
 0x154   : > { %v531_v19 = vadd.f32 %v526_v61, %v485_v16  ;;  %v545_v63 = vadd.f32 %v540_v62, %v499_v32  ;;  %v512_v0 = vpop.permute.xlu1 %511  ;;  %v596_v9 = vpop.permute.xlu0 %595 }
 0x155   : > { %v514_v17 = vsel %vm513_vm3, %v510_v58, %v512_v0 }
 0x156   : > { %v527_v2 = vmul.f32 %v521_v26, %v514_v17  ;;  %v541_v3 = vmul.f32 %v535_v48, %v514_v17 }
 0x158   : > { %v532_v4 = vadd.f32 %v527_v2, %v486_v23  ;;  %v546_v6 = vadd.f32 %v541_v3, %v500_v5  ;;  %v1995_v7 = vpop.permute.xlu1 %672  ;;  %v600_v15 = vpop.permute.xlu0 %599 }
 0x15c   : > { %v550_v10 = vpop.permute.xlu1 %549  ;;  %v604_v29 = vpop.permute.xlu0 %603 }
 0x15d   : > { %v563_v28 = vsel %vm559_vm4, %v550_v10, %v552_v56  ;;  %v564_v60 = vsel %vm559_vm4, %v1981_v51, %v550_v10 }
 0x15e   : > { %v584_v11 = vmul.f32 %v1985_v55, %v563_v28  ;;  %v569_v62 = vmul.f32 %v1987_v57, %v564_v60  ;;  %v583_v0 = vmul.f32 %v1985_v55, %v564_v60  ;;  %v570_v17 = vmul.f32 %v1987_v57, %v563_v28 }
 0x160   : > { %v2001_v12 = vadd.f32 %v584_v11, %v543_v52  ;;  %v554_v14 = vpop.permute.xlu1 %553  ;;  %v640_v38 = vpop.permute.xlu0 %639  ;;  %v574_v11 = vadd.f32 %v569_v62, %v1973_v41 }
 0x161   : > { %v561_v16 = vsel %vm559_vm4, %v554_v14, %v556_v59  ;;  %v562_v18 = vsel %vm559_vm4, %v552_v56, %v554_v14 }
 0x162   : > { %v571_v20 = vmul.f32 %v1987_v57, %v562_v18  ;;  %v572_v22 = vmul.f32 %v1987_v57, %v561_v16  ;;  %v585_v23 = vmul.f32 %v1985_v55, %v562_v18  ;;  %v586_v25 = vmul.f32 %v1985_v55, %v561_v16 }
 0x163   : > { %v575_v18 = vadd.f32 %v570_v17, %v1979_v46 }
 0x164   : > { %v2011_v26 = vadd.f32 %v571_v20, %v530_v47  ;;  %v577_v24 = vadd.f32 %v572_v22, %v531_v19  ;;  %v2013_v27 = vadd.f32 %v585_v23, %v544_v54  ;;  %v591_v21 = vadd.f32 %v586_v25, %v545_v63  ;;  %v558_v31 = vpop.permute.xlu1 %557  ;;  %v644_v43 = vpop.permute.xlu0 %643 }
 0x165   : > { %v560_v30 = vsel %vm559_vm4, %v556_v59, %v558_v31 }
 0x166   : > { %v573_v32 = vmul.f32 %v1987_v57, %v560_v30  ;;  %v587_v33 = vmul.f32 %v1985_v55, %v560_v30 }
 0x168   : > { %v578_v34 = vadd.f32 %v573_v32, %v532_v4  ;;  %v592_v35 = vadd.f32 %v587_v33, %v546_v6  ;;  %v2019_v5 = vpop.permute.xlu1 %718  ;;  %v648_v59 = vpop.permute.xlu0 %647 }
 0x16c   : > { %v594_v37 = vpop.permute.xlu1 %593  ;;  %v686_v63 = vpop.permute.xlu0 %685 }
 0x16d   : > { %v610_v19 = vsel %vm605_vm5, %v594_v37, %v596_v9 }
 0x16e   : > { %v615_v4 = vmul.f32 %v1971_v40, %v610_v19  ;;  %v629_v51 = vmul.f32 %v1967_v36, %v610_v19 }
 0x170   : > { %v598_v39 = vpop.permute.xlu1 %597  ;;  %v690_v23 = vpop.permute.xlu0 %689  ;;  %v620_v25 = vadd.f32 %v615_v4, %v574_v11 }
 0x171   : > { %v609_v2 = vsel %vm605_vm5, %v596_v9, %v598_v39  ;;  %v588_v9 = vadd.f32 %v583_v0, %v1983_v53  ;;  %v608_v28 = vsel %vm605_vm5, %v598_v39, %v600_v15 }
 0x172   : > { %v616_v14 = vmul.f32 %v1971_v40, %v609_v2  ;;  %v630_v16 = vmul.f32 %v1967_v36, %v609_v2  ;;  %v631_v33 = vmul.f32 %v1967_v36, %v608_v28 }
 0x174   : > { %v602_v13 = vpop.permute.xlu1 %601  ;;  %v621_v32 = vadd.f32 %v616_v14, %v575_v18 }
 0x175   : > { %v606_v44 = vsel %vm605_vm5, %v602_v13, %v604_v29  ;;  %v607_v45 = vsel %vm605_vm5, %v600_v15, %v602_v13  ;;  %v635_v29 = vadd.f32 %v630_v16, %v2001_v12 }
 0x176   : > { %v618_v47 = vmul.f32 %v1971_v40, %v607_v45  ;;  %v619_v48 = vmul.f32 %v1971_v40, %v606_v44  ;;  %v632_v8 = vmul.f32 %v1967_v36, %v607_v45  ;;  %v633_v49 = vmul.f32 %v1967_v36, %v606_v44 }
 0x178   : > { %v2030_v50 = vadd.f32 %v618_v47, %v577_v24  ;;  %v624_v52 = vadd.f32 %v619_v48, %v578_v34  ;;  %v637_v54 = vadd.f32 %v632_v8, %v591_v21  ;;  %v638_v56 = vadd.f32 %v633_v49, %v592_v35  ;;  %v2032_v58 = vpop.permute.xlu1 %704  ;;  %v694_v8 = vpop.permute.xlu0 %693 }
 0x179   : > { %v634_v24 = vadd.f32 %v629_v51, %v588_v9  ;;  %v617_v21 = vmul.f32 %v1971_v40, %v608_v28 }
 0x17b   : > { %v622_v49 = vadd.f32 %v617_v21, %v2011_v26 }
 0x17c   : > { %v642_v61 = vpop.permute.xlu1 %641  ;;  %v932_v16 = vpop.permute.xlu0 %931 }
 0x17d   : > { %v656_v6 = vsel %vm651_vm6, %v640_v38, %v642_v61  ;;  %v655_v55 = vsel %vm651_vm6, %v642_v61, %v644_v43 }
 0x17e   : > { %v675_v20 = vmul.f32 %v1995_v7, %v656_v6  ;;  %v676_v53 = vmul.f32 %v1995_v7, %v655_v55  ;;  %v661_v34 = vmul.f32 %v1991_v1, %v656_v6  ;;  %v662_v35 = vmul.f32 %v1991_v1, %v655_v55 }
 0x180   : > { %v646_v3 = vpop.permute.xlu1 %645  ;;  %v680_v37 = vadd.f32 %v675_v20, %v634_v24  ;;  %v681_v13 = vadd.f32 %v676_v53, %v635_v29 }
 0x181   : > { %v653_v10 = vsel %vm651_vm6, %v646_v3, %v648_v59  ;;  %v654_v31 = vsel %vm651_vm6, %v644_v43, %v646_v3 }
 0x182   : > { %v678_v57 = vmul.f32 %v1995_v7, %v653_v10  ;;  %v677_v43 = vmul.f32 %v1995_v7, %v654_v31  ;;  %v664_v62 = vmul.f32 %v1991_v1, %v653_v10 }
 0x184   : > { %v683_v22 = vadd.f32 %v678_v57, %v637_v54  ;;  %v650_v41 = vpop.permute.xlu1 %649  ;;  %v667_v54 = vadd.f32 %v662_v35, %v621_v32  ;;  %v669_v57 = vadd.f32 %v664_v62, %v2030_v50 }
 0x185   : > { %v652_v15 = vsel %vm651_vm6, %v648_v59, %v650_v41 }
 0x186   : > { %v665_v46 = vmul.f32 %v1991_v1, %v652_v15  ;;  %v679_v30 = vmul.f32 %v1995_v7, %v652_v15  ;;  %v666_v7 = vadd.f32 %v661_v34, %v620_v25 }
 0x188   : > { %v670_v38 = vadd.f32 %v665_v46, %v624_v52  ;;  %v684_v39 = vadd.f32 %v679_v30, %v638_v56  ;;  %v688_v40 = vpop.permute.xlu1 %687  ;;  %v636_v52 = vadd.f32 %v631_v33, %v2013_v27  ;;  %v663_v56 = vmul.f32 %v1991_v1, %v654_v31 }
 0x189   : > { %v701_v44 = vsel %vm697_vm7, %v688_v40, %v690_v23  ;;  %v702_v45 = vsel %vm697_vm7, %v686_v63, %v688_v40  ;;  %v936_v40 = vpop.permute.xlu0 %935 }
 0x18a   : > { %v707_v36 = vmul.f32 %v2032_v58, %v702_v45  ;;  %v708_v12 = vmul.f32 %v2032_v58, %v701_v44  ;;  %v721_v47 = vmul.f32 %v2019_v5, %v702_v45  ;;  %v722_v48 = vmul.f32 %v2019_v5, %v701_v44 }
 0x18b   : > { %v682_v19 = vadd.f32 %v677_v43, %v636_v52  ;;  %v668_v1 = vadd.f32 %v663_v56, %v622_v49 }
 0x18c   : > { %v726_v59 = vadd.f32 %v721_v47, %v680_v37  ;;  %v727_v60 = vadd.f32 %v722_v48, %v681_v13  ;;  %v692_v61 = vpop.permute.xlu1 %691  ;;  %v712_v17 = vadd.f32 %v707_v36, %v666_v7  ;;  %v713_v26 = vadd.f32 %v708_v12, %v667_v54 }
 0x18d   : > { %v699_v63 = vsel %vm697_vm7, %v692_v61, %v694_v8  ;;  %v700_v0 = vsel %vm697_vm7, %v690_v23, %v692_v61  ;;  %v2114_v61 = vpop.permute.xlu0 %939 }
 0x18e   : > { %v731_v2 = vrot.slane %v726_v59, 4  ;;  %v732_v27 = vrot.slane %v727_v60, 4  ;;  %v709_v3 = vmul.f32 %v2032_v58, %v700_v0  ;;  %v710_v4 = vmul.f32 %v2032_v58, %v699_v63 }
 0x18f   : > { %v723_v51 = vmul.f32 %v2019_v5, %v700_v0  ;;  %v724_v6 = vmul.f32 %v2019_v5, %v699_v63  ;;  %v2120_v63 = vsel %vm513_vm3, %v932_v16, %v936_v40 }
 0x190   : > { %v736_v10 = vadd.f32 %v731_v2, %v712_v17  ;;  %v737_v11 = vadd.f32 %v732_v27, %v713_v26  ;;  %v696_v55 = vpop.permute.xlu1 %695  ;;  %v714_v25 = vadd.f32 %v709_v3, %v668_v1  ;;  %v715_v24 = vadd.f32 %v710_v4, %v669_v57 }
 0x191   : > { %v728_v9 = vadd.f32 %v723_v51, %v682_v19  ;;  %v729_v28 = vadd.f32 %v724_v6, %v683_v22  ;;  %v698_v14 = vsel %vm697_vm7, %v694_v8, %v696_v55  ;;  %v2132_v51 = vsel %vm513_vm3, %v936_v40, %v2114_v61 }
 0x192   : > { %v741_v18 = vmul.f32 0.63661975, %v736_v10  ;;  %v742_v20 = vmul.f32 0.63661975, %v737_v11  ;;  %v711_v41 = vmul.f32 %v2032_v58, %v698_v14  ;;  %v725_v23 = vmul.f32 %v2019_v5, %v698_v14 }
 0x193   : > { %v733_v53 = vrot.slane %v728_v9, 4  ;;  %v734_v15 = vrot.slane %v729_v28, 4 }
 0x194   : > { %v746_v21 = vadd.f32 0.5, %v741_v18  ;;  %v747_v31 = vadd.f32 0.5, %v742_v20  ;;  %v730_v46 = vadd.f32 %v725_v23, %v684_v39  ;;  %v716_v33 = vadd.f32 %v711_v41, %v670_v38  ;;  %v934_v37 = vpop.permute.xlu1 %933 }
 0x195   : > { %v738_v50 = vadd.f32 %v733_v53, %v714_v25  ;;  %v739_v30 = vadd.f32 %v734_v15, %v715_v24 }
 0x196   : > { %v751_v22 = vfloor.f32 %v746_v21  ;;  %v752_v32 = vfloor.f32 %v747_v31  ;;  %v735_v29 = vrot.slane %v730_v46, 4 }
 0x197   : > { %v743_v34 = vmul.f32 0.63661975, %v738_v50  ;;  %v744_v35 = vmul.f32 0.63661975, %v739_v30 }
 0x198   : > { %v761_v58 = vmul.f32 1.5707964, %v751_v22  ;;  %v762_v13 = vmul.f32 1.5707964, %v752_v32  ;;  %v2101_v5 = vadd.f32 %v735_v29, %v716_v33  ;;  %v1176_v45 = vtrunc.f32 %v751_v22  ;;  %v2112_v60 = vpop.permute.xlu1 %937 }
 0x199   : > { %v748_v43 = vadd.f32 0.5, %v743_v34  ;;  %v749_v44 = vadd.f32 0.5, %v744_v35  ;;  %v771_v39 = vmul.f32 -4.371139e-08, %v751_v22  ;;  %v772_v48 = vmul.f32 -4.371139e-08, %v752_v32 }
 0x19a   : > { %v766_v36 = vsub.f32 %v736_v10, %v761_v58  ;;  %v767_v12 = vsub.f32 %v737_v11, %v762_v13  ;;  %v745_v47 = vmul.f32 0.63661975, %v2101_v5  ;;  %v1177_v59 = vcvt.f32.s32 %v1176_v45 }
 0x19b   : > { %v2104_v8 = vfloor.f32 %v748_v43  ;;  %v2106_v38 = vfloor.f32 %v749_v44  ;;  %v1178_v2 = vtrunc.f32 %v752_v32  ;;  %v2127_v4 = vsel %vm513_vm3, %v934_v37, %v2112_v60 }
 0x19c   : > { %v776_v49 = vsub.f32 %v766_v36, %v771_v39  ;;  %v750_v52 = vadd.f32 0.5, %v745_v47  ;;  %v2108_v7 = vsub.f32 %v767_v12, %v772_v48  ;;  %v866_v11 = vand.u32 1, %v1177_v59 }
 0x19d   : > { %v763_v54 = vmul.f32 1.5707964, %v2104_v8  ;;  %v764_v56 = vmul.f32 1.5707964, %v2106_v38  ;;  %v773_v26 = vmul.f32 -4.371139e-08, %v2104_v8  ;;  %v1179_v20 = vcvt.f32.s32 %v1178_v2 }
 0x19e   : > { %v781_v62 = vmul.f32 %v776_v49, %v776_v49  ;;  %v2116_v19 = vfloor.f32 %v750_v52  ;;  %v774_v27 = vmul.f32 -4.371139e-08, %v2106_v38  ;;  %v782_v6 = vmul.f32 %v2108_v7, %v2108_v7 }
 0x19f   : > { %v768_v0 = vsub.f32 %v738_v50, %v763_v54  ;;  %v769_v17 = vsub.f32 %v739_v30, %v764_v56  ;;  %v886_v18 = vand.u32 2, %v1177_v59  ;;  %v906_v24 = vadd.s32 1, %v1177_v59  ;;  %v2166_v56 = vpop.permute.xlu1 %941 }
 0x1a0   : > { %v791_v3 = vmul.f32 -0.00019515296, %v781_v62  ;;  %v765_v10 = vmul.f32 1.5707964, %v2116_v19  ;;  %v821_v9 = vmul.f32 0.5, %v781_v62  ;;  %v786_v16 = vmul.f32 %v781_v62, %v776_v49 }
 0x1a1   : > { %v2136_v1 = vsub.f32 %v768_v0, %v773_v26  ;;  %v2139_v55 = vsub.f32 %v769_v17, %v774_v27  ;;  %v836_v28 = vmul.f32 2.4433157e-05, %v781_v62  ;;  %v775_v14 = vmul.f32 -4.371139e-08, %v2116_v19 }
 0x1a2   : > { %v796_v57 = vadd.f32 0.008332161, %v791_v3  ;;  %v831_v23 = vmul.f32 %v781_v62, %v781_v62  ;;  %v770_v15 = vsub.f32 %v2101_v5, %v765_v10  ;;  %vm2147_vm8 = vcmp.eq.s32.totalorder %v866_v11, 1 }
 0x1a3   : > { %v841_v25 = vadd.f32 -0.0013887316, %v836_v28  ;;  %v2144_v53 = vmul.f32 %v2136_v1, %v2136_v1  ;;  %v792_v31 = vmul.f32 -0.00019515296, %v782_v6  ;;  %v2153_v46 = vmul.f32 %v2139_v55, %v2139_v55 }
 0x1a4   : > { %v801_v41 = vmul.f32 %v796_v57, %v781_v62  ;;  %v826_v30 = vsub.f32 1.0, %v821_v9  ;;  %v911_v32 = vand.u32 2, %v906_v24  ;;  %v822_v29 = vmul.f32 0.5, %v782_v6 }
 0x1a5   : > { %v846_v22 = vmul.f32 %v841_v25, %v781_v62  ;;  %v797_v33 = vadd.f32 0.008332161, %v792_v31  ;;  %v837_v34 = vmul.f32 2.4433157e-05, %v782_v6  ;;  %vm2155_vm9 = vcmp.eq.s32.totalorder %v886_v18, 0 }
 0x1a6   : > { %v806_v50 = vadd.f32 -0.16666655, %v801_v41  ;;  %v867_v58 = vand.u32 1, %v1179_v20  ;;  %v2159_v13 = vsub.f32 %v770_v15, %v775_v14  ;;  %v887_v44 = vand.u32 2, %v1179_v20 }
 0x1a7   : > { %v851_v37 = vadd.f32 0.041666646, %v846_v22  ;;  %v802_v5 = vmul.f32 %v797_v33, %v782_v6  ;;  %v842_v43 = vadd.f32 -0.0013887316, %v837_v34  ;;  %v787_v12 = vmul.f32 %v782_v6, %v2108_v7 }
 0x1a8   : > { %v811_v35 = vmul.f32 %v806_v50, %v786_v16  ;;  %v832_v39 = vmul.f32 %v782_v6, %v782_v6  ;;  %vm2162_vm10 = vcmp.eq.s32.totalorder %v911_v32, 0  ;;  %v827_v52 = vsub.f32 1.0, %v822_v29 }
 0x1a9   : > { %v856_v36 = vmul.f32 %v851_v37, %v831_v23  ;;  %v807_v48 = vadd.f32 -0.16666655, %v802_v5  ;;  %v847_v54 = vmul.f32 %v842_v43, %v782_v6  ;;  %vm2168_vm11 = vcmp.eq.s32.totalorder %v867_v58, 1 }
 0x1aa   : > { %v816_v45 = vadd.f32 %v811_v35, %v776_v49  ;;  %v907_v0 = vadd.s32 1, %v1179_v20  ;;  %v793_v49 = vmul.f32 -0.00019515296, %v2144_v53  ;;  %vm2173_vm12 = vcmp.eq.s32.totalorder %v887_v44, 0 }
 0x1ab   : > { %v861_v59 = vadd.f32 %v856_v36, %v826_v30  ;;  %v812_v17 = vmul.f32 %v807_v48, %v787_v12  ;;  %v852_v26 = vadd.f32 0.041666646, %v847_v54  ;;  %v1180_v27 = vtrunc.f32 %v2104_v8  ;;  %v2217_v36 = vpop.permute.xlu0 %943 }
 0x1ac   : > { %v962_v10 = vsel %vm513_vm3, %v2112_v60, %v2166_v56  ;;  %v798_v11 = vadd.f32 0.008332161, %v793_v49  ;;  %v912_v16 = vand.u32 2, %v907_v0  ;;  %v788_v8 = vmul.f32 %v2144_v53, %v2136_v1 }
 0x1ad   : > { %v876_v3 = vsel %vm2147_vm8, %v861_v59, %v816_v45  ;;  %v881_v6 = vsel %vm2147_vm8, %v816_v45, %v861_v59  ;;  %v817_v28 = vadd.f32 %v812_v17, %v2108_v7  ;;  %v857_v14 = vmul.f32 %v852_v26, %v832_v39  ;;  %v2222_v17 = vpop.permute.xlu1 %945 }
 0x1ae   : > { %v896_v57 = vsub.f32 0.0, %v876_v3  ;;  %v921_v9 = vsub.f32 0.0, %v881_v6  ;;  %v803_v18 = vmul.f32 %v798_v11, %v2144_v53  ;;  %v838_v20 = vmul.f32 2.4433157e-05, %v2144_v53 }
 0x1af   : > { %v862_v23 = vadd.f32 %v857_v14, %v827_v52  ;;  %v1181_v25 = vcvt.f32.s32 %v1180_v27  ;;  %vm917_vm13 = vcmp.eq.s32.totalorder %v912_v16, 0  ;;  %v823_v35 = vmul.f32 0.5, %v2144_v53 }
 0x1b0   : > { %v901_v41 = vsel %vm2155_vm9, %v876_v3, %v896_v57  ;;  %v926_v60 = vsel %vm2162_vm10, %v881_v6, %v921_v9  ;;  %v808_v30 = vadd.f32 -0.16666655, %v803_v18  ;;  %v843_v22 = vadd.f32 -0.0013887316, %v838_v20 }
 0x1b1   : > { %v965_v24 = vmul.f32 %v2120_v63, %v926_v60  ;;  %v985_v7 = vmul.f32 %v2120_v63, %v901_v41  ;;  %v970_v15 = vmul.f32 %v2127_v4, %v901_v41  ;;  %v990_v21 = vmul.f32 %v2127_v4, %v926_v60 }
 0x1b2   : > { %v877_v31 = vsel %vm2168_vm11, %v862_v23, %v817_v28  ;;  %v882_v50 = vsel %vm2168_vm11, %v817_v28, %v862_v23  ;;  %v833_v63 = vmul.f32 %v2144_v53, %v2144_v53  ;;  %v848_v4 = vmul.f32 %v843_v22, %v2144_v53  ;;  %v2253_v22 = vpop.permute.xlu0 %947 }
 0x1b3   : > { %v975_v32 = vsub.f32 %v965_v24, %v970_v15  ;;  %v995_v33 = vadd.f32 %v990_v21, %v985_v7  ;;  %v897_v29 = vsub.f32 0.0, %v877_v31  ;;  %v922_v34 = vsub.f32 0.0, %v882_v50 }
 0x1b4   : > { %v813_v58 = vmul.f32 %v808_v30, %v788_v8  ;;  %v908_v5 = vadd.s32 1, %v1181_v25  ;;  %v853_v12 = vadd.f32 0.041666646, %v848_v4  ;;  %v868_v39 = vand.u32 1, %v1181_v25 }
 0x1b5   : > { %980 = vst [vmem:[%s2209_s23] sm:$0xff] %v975_v32  ;;  %1000 = vst [vmem:[%s2209_s23 + $0x28] sm:$0xff] %v995_v33  ;;  %v902_v37 = vsel %vm2173_vm12, %v877_v31, %v897_v29  ;;  %v927_v40 = vsel %vm917_vm13, %v882_v50, %v922_v34  ;;  %v888_v47 = vand.u32 2, %v1181_v25  ;;  %v1182_v48 = vtrunc.f32 %v2106_v38 }
 0x1b6   : > { %v966_v43 = vmul.f32 %v2132_v51, %v927_v40  ;;  %v986_v44 = vmul.f32 %v2132_v51, %v902_v37  ;;  %v971_v45 = vmul.f32 %v962_v10, %v902_v37  ;;  %v991_v53 = vmul.f32 %v962_v10, %v927_v40 }
 0x1b7   : > { %v794_v59 = vmul.f32 -0.00019515296, %v2153_v46  ;;  %v818_v62 = vadd.f32 %v813_v58, %v2136_v1  ;;  %v828_v0 = vsub.f32 1.0, %v823_v35  ;;  %v858_v49 = vmul.f32 %v853_v12, %v833_v63 }
 0x1b8   : > { %v976_v52 = vsub.f32 %v966_v43, %v971_v45  ;;  %v996_v54 = vadd.f32 %v991_v53, %v986_v44  ;;  %v913_v51 = vand.u32 2, %v908_v5  ;;  %v2226_v26 = vmul.f32 %v2159_v13, %v2159_v13  ;;  %v950_v43 = vpop.permute.xlu1 %949 }
 0x1b9   : > { %v959_v38 = vsel %vm513_vm3, %v2114_v61, %v2217_v36  ;;  %v799_v2 = vadd.f32 0.008332161, %v794_v59  ;;  %v839_v27 = vmul.f32 2.4433157e-05, %v2153_v46  ;;  %v863_v1 = vadd.f32 %v858_v49, %v828_v0 }
 0x1ba   : > { %981 = vst [vmem:[%s2209_s23 + $0x8] sm:$0xff] %v976_v52  ;;  %1001 = vst [vmem:[%s2209_s23 + $0x30] sm:$0xff] %v996_v54  ;;  %vm873_vm14 = vcmp.eq.s32.totalorder %v868_v39, 1  ;;  %vm2235_vm15 = vcmp.eq.s32.totalorder %v888_v47, 0  ;;  %v1183_v6 = vcvt.f32.s32 %v1182_v48  ;;  %v960_v10 = vsel %vm513_vm3, %v2166_v56, %v2222_v17 }
 0x1bb   : > { %v789_v11 = vmul.f32 %v2153_v46, %v2139_v55  ;;  %v804_v61 = vmul.f32 %v799_v2, %v2153_v46  ;;  %v844_v57 = vadd.f32 -0.0013887316, %v839_v27  ;;  %v878_v9 = vsel %vm873_vm14, %v863_v1, %v818_v62 }
 0x1bc   : > { %v883_v28 = vsel %vm873_vm14, %v818_v62, %v863_v1  ;;  %vm918_vm0 = vcmp.eq.s32.totalorder %v913_v51, 0  ;;  %v824_v14 = vmul.f32 0.5, %v2153_v46  ;;  %v898_v16 = vsub.f32 0.0, %v878_v9 }
 0x1bd   : > { %v923_v8 = vsub.f32 0.0, %v883_v28  ;;  %v809_v18 = vadd.f32 -0.16666655, %v804_v61  ;;  %v849_v20 = vmul.f32 %v844_v57, %v2153_v46  ;;  %v834_v41 = vmul.f32 %v2153_v46, %v2153_v46 }
 0x1be   : > { %v869_v56 = vand.u32 1, %v1183_v6  ;;  %v909_v60 = vadd.s32 1, %v1183_v6  ;;  %v795_v23 = vmul.f32 -0.00019515296, %v2226_v26  ;;  %v903_v25 = vsel %vm2235_vm15, %v878_v9, %v898_v16  ;;  %v952_v16 = vpop.permute.xlu0 %951 }
 0x1bf   : > { %v928_v24 = vsel %vm918_vm0, %v883_v28, %v923_v8  ;;  %v814_v7 = vmul.f32 %v809_v18, %v789_v11  ;;  %v854_v15 = vadd.f32 0.041666646, %v849_v20  ;;  %v987_v31 = vmul.f32 %v959_v38, %v903_v25  ;;  %v954_v18 = vpop.permute.xlu1 %953 }
 0x1c0   : > { %v967_v21 = vmul.f32 %v959_v38, %v928_v24  ;;  %v972_v50 = vmul.f32 %v960_v10, %v903_v25  ;;  %v992_v30 = vmul.f32 %v960_v10, %v928_v24  ;;  %v829_v32 = vsub.f32 1.0, %v824_v14 }
 0x1c1   : > { %v819_v46 = vadd.f32 %v814_v7, %v2139_v55  ;;  %v859_v33 = vmul.f32 %v854_v15, %v834_v41  ;;  %v800_v29 = vadd.f32 0.008332161, %v795_v23  ;;  %v889_v63 = vand.u32 2, %v1183_v6 }
 0x1c2   : > { %v977_v34 = vsub.f32 %v967_v21, %v972_v50  ;;  %v997_v35 = vadd.f32 %v992_v30, %v987_v31  ;;  %v1184_v4 = vtrunc.f32 %v2116_v19  ;;  %v914_v40 = vand.u32 2, %v909_v60 }
 0x1c3   : > { %v864_v37 = vadd.f32 %v859_v33, %v829_v32  ;;  %v805_v58 = vmul.f32 %v800_v29, %v2226_v26  ;;  %v840_v5 = vmul.f32 2.4433157e-05, %v2226_v26  ;;  %vm874_vm1 = vcmp.eq.s32.totalorder %v869_v56, 1 }
 0x1c4   : > { %982 = vst [vmem:[%s2209_s23 + $0x10] sm:$0xff] %v977_v34  ;;  %1002 = vst [vmem:[%s2209_s23 + $0x38] sm:$0xff] %v997_v35  ;;  %v957_v55 = vsel %vm513_vm3, %v2217_v36, %v2253_v22  ;;  %v1185_v47 = vcvt.f32.s32 %v1184_v4  ;;  %v790_v48 = vmul.f32 %v2226_v26, %v2159_v13  ;;  %vm894_vm2 = vcmp.eq.s32.totalorder %v889_v63, 0 }
 0x1c5   : > { %v879_v44 = vsel %vm874_vm1, %v864_v37, %v819_v46  ;;  %v884_v45 = vsel %vm874_vm1, %v819_v46, %v864_v37  ;;  %v810_v53 = vadd.f32 -0.16666655, %v805_v58  ;;  %v845_v12 = vadd.f32 -0.0013887316, %v840_v5 }
 0x1c6   : > { %v899_v19 = vsub.f32 0.0, %v879_v44  ;;  %v924_v39 = vsub.f32 0.0, %v884_v45  ;;  %vm919_vm4 = vcmp.eq.s32.totalorder %v914_v40, 0  ;;  %v958_v52 = vsel %vm513_vm3, %v2222_v17, %v950_v43 }
 0x1c7   : > { %v850_v54 = vmul.f32 %v845_v12, %v2226_v26  ;;  %v815_v62 = vmul.f32 %v810_v53, %v790_v48  ;;  %v825_v0 = vmul.f32 0.5, %v2226_v26  ;;  %v835_v27 = vmul.f32 %v2226_v26, %v2226_v26 }
 0x1c8   : > { %v904_v36 = vsel %vm894_vm2, %v879_v44, %v899_v19  ;;  %v929_v59 = vsel %vm919_vm4, %v884_v45, %v924_v39  ;;  %v910_v3 = vadd.s32 1, %v1185_v47  ;;  %v870_v10 = vand.u32 1, %v1185_v47 }
 0x1c9   : > { %v968_v49 = vmul.f32 %v957_v55, %v929_v59  ;;  %v988_v51 = vmul.f32 %v957_v55, %v904_v36  ;;  %v973_v38 = vmul.f32 %v958_v52, %v904_v36  ;;  %v993_v2 = vmul.f32 %v958_v52, %v929_v59 }
 0x1ca   : > { %v855_v1 = vadd.f32 0.041666646, %v850_v54  ;;  %v820_v11 = vadd.f32 %v815_v62, %v2159_v13  ;;  %v830_v61 = vsub.f32 1.0, %v825_v0  ;;  %v890_v28 = vand.u32 2, %v1185_v47 }
 0x1cb   : > { %v978_v6 = vsub.f32 %v968_v49, %v973_v38  ;;  %v998_v17 = vadd.f32 %v993_v2, %v988_v51  ;;  %v915_v14 = vand.u32 2, %v910_v3  ;;  %vm875_vm5 = vcmp.eq.s32.totalorder %v870_v10, 1 }
 0x1cc   : > { %v860_v57 = vmul.f32 %v855_v1, %v835_v27  ;;  %vm895_vm6 = vcmp.eq.s32.totalorder %v890_v28, 0  ;;  %v955_v60 = vsel %vm513_vm3, %v2253_v22, %v952_v16  ;;  %v956_v23 = vsel %vm513_vm3, %v950_v43, %v954_v18 }
 0x1cd   : > { %983 = vst [vmem:[%s2209_s23 + $0x18] sm:$0xff] %v978_v6  ;;  %1003 = vst [vmem:[%s2209_s23 + $0x40] sm:$0xff] %v998_v17  ;;  %vm920_vm7 = vcmp.eq.s32.totalorder %v915_v14, 0 }
 0x1ce   : > { %v865_v9 = vadd.f32 %v860_v57, %v830_v61 }
 0x1d0   : > { %v880_v8 = vsel %vm875_vm5, %v865_v9, %v820_v11  ;;  %v885_v26 = vsel %vm875_vm5, %v820_v11, %v865_v9 }
 0x1d1   : > { %v900_v20 = vsub.f32 0.0, %v880_v8  ;;  %v925_v41 = vsub.f32 0.0, %v885_v26 }
 0x1d3   : > { %v905_v13 = vsel %vm895_vm6, %v880_v8, %v900_v20  ;;  %v930_v56 = vsel %vm920_vm7, %v885_v26, %v925_v41 }
 0x1d4   : > { %v969_v25 = vmul.f32 %v955_v60, %v930_v56  ;;  %v989_v24 = vmul.f32 %v955_v60, %v905_v13  ;;  %v974_v7 = vmul.f32 %v956_v23, %v905_v13  ;;  %v994_v15 = vmul.f32 %v956_v23, %v930_v56 }
 0x1d6   : > { %v979_v21 = vsub.f32 %v969_v25, %v974_v7  ;;  %v999_v31 = vadd.f32 %v994_v15, %v989_v24 }
 0x1d8   : > { %984 = vst [vmem:[%s2209_s23 + $0x20] sm:$0xff] %v979_v21  ;;  %1004 = vst [vmem:[%s2209_s23 + $0x48] sm:$0xff] %v999_v31 }
 0x1d9   : > { %1402 = shalt.err (!%p1399_p13)
}
 0x1da   : > { %s1403_s30 = scalar_lea.hbm %s2287_s22, 1280  ;;  %s1407_s9 = scalar_lea.hbm %s2343_s3, 2560 }
 0x1db   : > { %p1404_p11 = scmp.ne.s32.totalorder %s2287_s22, %s1403_s30  ;;  %p1408_p6 = scmp.lt.u32.totalorder %s2287_s22, %s2343_s3 }
 0x1dc   : > { %p1409_p3 = scmp.lt.u32.totalorder %s1407_s9, %s1403_s30  ;;  %p1411_p0 = scmp.lt.u32.totalorder %s1403_s30, %s2287_s22 }
 0x1dd   : > { %p1405_p5 = pnand %p1404_p11, %p2379_p7 }
 0x1de   : > { %p1410_p2 = por %p1409_p3, %p1408_p6 }
 0x1df   : > { %p1406_p4 = pneg %p1405_p5 }
 0x1e0   : > { %p1412_p8 = por %p1411_p0, %p1410_p2 }
 0x1e2   : > { %p1413_p9 = pnand %p1412_p8, %p1406_p4 }
 0x1e4   : > { %1416 = shalt.err (!%p1413_p9)
}
 0x1e5   : > { %s1503_s29 = smov 640   ;;  %s1504_s7 = smov 40  }
 0x1e6   : > { %1193 = dma.vmem_to_hbm [thread:$0]  (%p2379_p7), %s2289_s6, 1280, %s2287_s22, %s1006_s28, %s1503_s29, %s1503_s29, %s1504_s7  }
 0x1e7 PF: > { %s1036_s10 = sand.u32 1, %s1455_s12   ;;  %p2380_p12 = scmp.ne.s32.totalorder %s2356_s27, 0 }
 0x1e8   : > { %p2381_p1 = scmp.ge.s32.totalorder %s1475_s17, 2  ;;  %s1037_s0 = scalar_lea.sflag [#allocation4], %s1036_s10 }
 0x1ea   : > { %p1206_p10 = pnand %p2381_p1, %p2380_p12 }
 0x1ec   : > { %1450 = dma.done.wait (!%p1206_p10), %s1037_s0, 1280  }
 0x1ed   : > { %1452 = vsyncadd (!%p1206_p10), %s1037_s0, 4294966016  ;;  %s22_s17 = sadd.s32 1, %s1475_s17   ;;  %s2382_s23 = sld [smem:[#allocation13_spill]] }
 0x1ee   : > { %p19_p13 = scmp.ge.s32.totalorder %s22_s17, 4   ;;  %s2383_s25 = sld [smem:[#allocation12_spill]] }
 0x1ef   : > { %s2384_s12 = smov %s1459_s13  ;;  %s2385_s13 = smov %s1463_s14 }
 0x1f0   : > { %s2387_s15 = smov %s1471_s16  ;;  %21 = sbr.rel (!%p19_p13) target bundleno = 11 (0xb), region = 102 }
 0x1f3   : > { %s2386_s14 = smov %s2382_s23 }
 0x1f4   : > { %s2388_s16 = smov %s2383_s25 }
 0x1f7   :  { %1042 = vsyncpa [#allocation3], 1 }
 0x1f8   :  { %1044 = vsyncpa [#allocation3 + $0x1], 1 }
 0x1f9   :  { %1045 = vsyncpa [#allocation6], 1 }
 0x1fa   :  { %1047 = vsyncpa [#allocation6 + $0x1], 1 }
 0x1fb   :  { %1048 = vsyncpa [#allocation4], 1 }
 0x1fc   :  { %1050 = vsyncpa [#allocation4 + $0x1], 1 }

</bundles_post_ra>
